<compile_context>
chip_gen: v7x
topology: tpu7x:2x2x1
jax: 0.10.0
libtpu: 0.0.40
codegen_flags: <defaults>
</compile_context>

<pallas_src>
import functools

import jax
import jax.numpy as jnp
from jax.experimental import pallas as pl
from jax.experimental.pallas import tpu as pltpu

_SQRT_HALF = 0.7071067811865476
_TM_MAX = 256  # batch tile: matches v6e/v7x 256x256 MXU; v5e consumes it in 2 passes


def _gelu_exact(x):
    # PyTorch nn.GELU() default (approximate='none'): 0.5*x*(1+erf(x/sqrt(2)))
    return 0.5 * x * (1.0 + jax.lax.erf(x * _SQRT_HALF))


def _round_up(n, m):
    return ((n + m - 1) // m) * m


def _pad2d(a, rows, cols):
    return jnp.pad(a, ((0, rows - a.shape[0]), (0, cols - a.shape[1])))


# ---------------------------------------------------------------------------
# Fused kernel: one batch tile per grid step; whole layer stack in one body.
# refs = (x_tile, Wab, bab, [Wh_i, bh_i]*, Wout, bout, out_tile)
# ---------------------------------------------------------------------------
def fused_mlp_kernel(*refs, num_hidden, h0_pad, compute_dtype, mm_precision):
    x_ref, wab_ref, bab_ref = refs[0], refs[1], refs[2]
    idx = 3
    hidden_refs = []
    for _ in range(num_hidden):
        hidden_refs.append((refs[idx], refs[idx + 1]))
        idx += 2
    wout_ref, bout_ref, o_ref = refs[idx], refs[idx + 1], refs[idx + 2]

    def dense(h, w_ref, b_ref):
        return (
            jnp.dot(
                h.astype(compute_dtype),
                w_ref[...],
                preferred_element_type=jnp.float32,
                precision=mm_precision,
            )
            + b_ref[...]
        )

    x = x_ref[...]

    # GeGLU: single MXU pass over the pre-concatenated [Wa | Wb].
    ab = dense(x, wab_ref, bab_ref)
    a = ab[:, :h0_pad]          # slice at a 128-lane boundary -> no relayout
    b = ab[:, h0_pad:]
    h = a * _gelu_exact(b)

    # Hidden Linear + GELU layers (all activations stay in VMEM/vregs).
    # TODO(synk): column-chunk these intermediates for large hidden dims to
    # bound vreg pressure (not needed at these sizes).
    for w_ref, b_ref in hidden_refs:
        h = _gelu_exact(dense(h, w_ref, b_ref))

    # Output Linear.
    o_ref[...] = dense(h, wout_ref, bout_ref).astype(o_ref.dtype)


# ---------------------------------------------------------------------------
# One-time weight packing (hoisted out of the forward path).
# ---------------------------------------------------------------------------
def pack_mlp_params(params, matmul_dtype=jnp.float32):
    """Pads all weights to lane-dense shapes and fuses the GeGLU branches.

    Call once at init; fused_mlp() then reads these padded arrays directly.
    """
    matmul_dtype = jnp.dtype(matmul_dtype)
    wa, ba, wb, bb = params["geglu"]
    hidden = params["hidden"]
    w_out, b_out = params["out"]

    input_dim = wa.shape[0]
    h0 = wa.shape[1]
    out_dim = w_out.shape[1]

    in_pad = _round_up(input_dim, 128)
    h0_pad = _round_up(h0, 128)
    out_pad = _round_up(out_dim, 128)

    wab = jnp.concatenate(
        [_pad2d(wa, in_pad, h0_pad), _pad2d(wb, in_pad, h0_pad)], axis=1
    ).astype(matmul_dtype)
    bab = jnp.concatenate(
        [_pad2d(ba, 1, h0_pad), _pad2d(bb, 1, h0_pad)], axis=1
    ).astype(jnp.float32)

    weights = [wab, bab]
    hidden_pads = []
    cur_pad = h0_pad
    for w, b in hidden:
        d_pad = _round_up(w.shape[1], 128)
        weights.append(_pad2d(w, cur_pad, d_pad).astype(matmul_dtype))
        weights.append(_pad2d(b, 1, d_pad).astype(jnp.float32))
        hidden_pads.append(d_pad)
        cur_pad = d_pad
    weights.append(_pad2d(w_out, cur_pad, out_pad).astype(matmul_dtype))
    weights.append(_pad2d(b_out, 1, out_pad).astype(jnp.float32))

    return {
        "weights": weights,
        "input_dim": input_dim,
        "in_pad": in_pad,
        "h0_pad": h0_pad,
        "hidden_pads": tuple(hidden_pads),
        "out_dim": out_dim,
        "out_pad": out_pad,
        "matmul_dtype": matmul_dtype,
    }


def _vmem_limit_bytes(need_bytes):
    """Generation-aware VMEM limit: footprint + headroom, < physical VMEM."""
    cap = 64 << 20  # conservative default: v7x per-TensorCore VMEM
    try:
        info = pltpu.get_tpu_info()
        cap = int(getattr(info, "vmem_capacity_bytes", cap))
    except Exception:
        pass
    return int(min(max(2 * need_bytes + (8 << 20), 16 << 20), int(0.85 * cap)))


# ---------------------------------------------------------------------------
# Forward wrapper.
# ---------------------------------------------------------------------------
def fused_mlp(x, packed):
    """Runs the whole MLP forward in one Pallas kernel. x: [batch, input_dim]."""
    batch, input_dim = x.shape
    assert input_dim == packed["input_dim"]

    in_pad = packed["in_pad"]
    h0_pad = packed["h0_pad"]
    hidden_pads = packed["hidden_pads"]
    out_dim = packed["out_dim"]
    out_pad = packed["out_pad"]
    weights = packed["weights"]
    matmul_dtype = packed["matmul_dtype"]
    num_hidden = len(hidden_pads)
    itemsize = jnp.dtype(x.dtype).itemsize

    # Batch tiling: rows aligned for sublane packing (16 if bf16 operands),
    # tiles of up to _TM_MAX rows per grid step.
    row_align = 16 if matmul_dtype == jnp.dtype(jnp.bfloat16) else 8
    m_r = _round_up(max(batch, row_align), row_align)
    tm = min(_TM_MAX, m_r)
    m_pad = _round_up(m_r, tm)
    n_tiles = m_pad // tm

    # Only x needs per-call padding (rows are garbage-but-sliced-off; padded
    # feature columns stay exactly 0 because padded weight rows/cols are 0).
    x_p = jnp.pad(x, ((0, m_pad - batch), (0, in_pad - input_dim)))

    # BlockSpecs: x/out stream per batch tile (double-buffered by the pipeline);
    # weights are VMEM-resident across all grid steps.
    x_spec = pl.BlockSpec((tm, in_pad), lambda i: (i, 0))
    out_spec = pl.BlockSpec((tm, out_pad), lambda i: (i, 0))
    w_specs = [pl.BlockSpec(w.shape, lambda i: (0, 0)) for w in weights]
    # TODO(synk): for weight stacks that outgrow VMEM, move layer weights to
    # memory_space=pl.ANY and double-buffer them manually (prefetch layer i+1's
    # weights while layer i's matmul runs).

    # Cost estimate (whole call, padded shapes).
    kn_pairs = [(in_pad, 2 * h0_pad)]
    prev = h0_pad
    for d in hidden_pads:
        kn_pairs.append((prev, d))
        prev = d
    kn_pairs.append((prev, out_pad))
    flops = 2 * m_pad * sum(k * n for k, n in kn_pairs)
    transcendentals = m_pad * (h0_pad + sum(hidden_pads))
    weight_bytes = sum(int(w.size) * w.dtype.itemsize for w in weights)
    bytes_accessed = (
        weight_bytes + int(x_p.size) * itemsize + m_pad * out_pad * itemsize
    )
    cost = pl.CostEstimate(
        flops=int(flops),
        transcendentals=int(transcendentals),
        bytes_accessed=int(bytes_accessed),
    )

    # VMEM footprint: resident weights + double-buffered x/out tiles + f32
    # intermediates of every layer for one batch tile.
    act_bytes = tm * (2 * h0_pad + sum(hidden_pads) + out_pad) * 4
    need = weight_bytes + 2 * tm * (in_pad + out_pad) * itemsize + act_bytes

    mm_precision = (
        jax.lax.Precision.HIGHEST if matmul_dtype == jnp.dtype(jnp.float32) else None
    )
    kernel = functools.partial(
        fused_mlp_kernel,
        num_hidden=num_hidden,
        h0_pad=h0_pad,
        compute_dtype=matmul_dtype,
        mm_precision=mm_precision,
    )

    out_p = pl.pallas_call(
        kernel,
        out_shape=jax.ShapeDtypeStruct((m_pad, out_pad), x.dtype),
        grid_spec=pltpu.PrefetchScalarGridSpec(
            num_scalar_prefetch=0,
            grid=(n_tiles,),
            in_specs=[x_spec] + w_specs,
            out_specs=out_spec,
        ),
        compiler_params=pltpu.CompilerParams(
            # batch tiles are independent -> shard across v7x's 2 TensorCores
            dimension_semantics=("parallel",),
            vmem_limit_bytes=_vmem_limit_bytes(need),
        ),
        cost_estimate=cost,
    )(x_p, *weights)

    return out_p[:batch, :out_dim]


# ---------------------------------------------------------------------------
# Parameter init (weights stored as [in, out] so the kernel computes x @ W + b,
# equivalent to PyTorch's x @ W_pt.T + b).
# ---------------------------------------------------------------------------
def init_mlp_params(key, input_dim, hidden_dims, output_dim, dtype=jnp.float32):
    params = {}
    k = key

    def dense(k, fan_in, fan_out):
        k, kw, kb = jax.random.split(k, 3)
        bound = 1.0 / jnp.sqrt(fan_in)
        w = jax.random.uniform(kw, (fan_in, fan_out), dtype, -bound, bound)
        b = jax.random.uniform(kb, (1, fan_out), dtype, -bound, bound)
        return k, w, b

    k, wa, ba = dense(k, input_dim, hidden_dims[0])
    k, wb, bb = dense(k, input_dim, hidden_dims[0])
    params["geglu"] = (wa, ba, wb, bb)

    hidden = []
    cur = hidden_dims[0]
    for dim in hidden_dims[1:]:
        k, w, b = dense(k, cur, dim)
        hidden.append((w, b))
        cur = dim
    params["hidden"] = hidden

    k, w, b = dense(k, cur, output_dim)
    params["out"] = (w, b)
    return params


def mlp_forward(packed_params, x):
    return fused_mlp(x, packed_params)


# ---------------------------------------------------------------------------
if __name__ == "__main__":
    input_dim = 32
    hidden_dims = [64, 48]
    output_dim = 16
    batch = 8

    key = jax.random.PRNGKey(0)
    kx, kp = jax.random.split(key)
    x = jax.random.normal(kx, (batch, input_dim), jnp.float32)
    params = init_mlp_params(kp, input_dim, hidden_dims, output_dim)

    # Weight packing done ONCE (hoisted out of the per-call path).
    packed = pack_mlp_params(params, matmul_dtype=jnp.float32)

    out = mlp_forward(packed, x)
    jax.block_until_ready(out)

    # Pure-JAX reference (exact-erf GELU, HIGHEST-precision f32 matmuls).
    hp = jax.lax.Precision.HIGHEST
    wa, ba, wb, bb = params["geglu"]
    ref = (jnp.dot(x, wa, precision=hp) + ba) * _gelu_exact(
        jnp.dot(x, wb, precision=hp) + bb
    )
    for w, b in params["hidden"]:
        ref = _gelu_exact(jnp.dot(ref, w, precision=hp) + b)
    w, b = params["out"]
    ref = jnp.dot(ref, w, precision=hp) + b

    assert out.shape == (batch, output_dim)
    assert jnp.allclose(out, ref, atol=2e-5, rtol=2e-5)

    print("KERNEL_OK")
</pallas_src>

<mosaic_0001>
module attributes {stable_mosaic.version = 11 : i64} {
  func.func @fused_mlp_kernel(%arg0: i32, %arg1: memref<8x128xf32, #tpu.memory_space<vmem>>, %arg2: memref<128x256xf32, #tpu.memory_space<vmem>>, %arg3: memref<1x256xf32, #tpu.memory_space<vmem>>, %arg4: memref<128x128xf32, #tpu.memory_space<vmem>>, %arg5: memref<1x128xf32, #tpu.memory_space<vmem>>, %arg6: memref<128x128xf32, #tpu.memory_space<vmem>>, %arg7: memref<1x128xf32, #tpu.memory_space<vmem>>, %arg8: memref<8x128xf32, #tpu.memory_space<vmem>>) attributes {dimension_semantics = [#tpu.dimension_semantics<parallel>], iteration_bounds = array<i64: 1>, scalar_prefetch = 0 : i64, scratch_operands = 0 : i64, tpu.core_type = #tpu.core_type<tc>, window_params = [{transform_indices = @transform_0, window_bounds = array<i64: 8, 128>}, {pipeline_mode = #tpu.pipeline_mode<synchronous>, transform_indices = @transform_1, window_bounds = array<i64: 128, 256>}, {pipeline_mode = #tpu.pipeline_mode<synchronous>, transform_indices = @transform_2, window_bounds = array<i64: 1, 256>}, {pipeline_mode = #tpu.pipeline_mode<synchronous>, transform_indices = @transform_3, window_bounds = array<i64: 128, 128>}, {pipeline_mode = #tpu.pipeline_mode<synchronous>, transform_indices = @transform_4, window_bounds = array<i64: 1, 128>}, {pipeline_mode = #tpu.pipeline_mode<synchronous>, transform_indices = @transform_5, window_bounds = array<i64: 128, 128>}, {pipeline_mode = #tpu.pipeline_mode<synchronous>, transform_indices = @transform_6, window_bounds = array<i64: 1, 128>}, {transform_indices = @transform_7, window_bounds = array<i64: 8, 128>}]} {
    %c0 = arith.constant 0 : index
    %c0_0 = arith.constant 0 : index
    %0 = vector.load %arg1[%c0, %c0_0] : memref<8x128xf32, #tpu.memory_space<vmem>>, vector<8x128xf32>
    %c0_1 = arith.constant 0 : index
    %c0_2 = arith.constant 0 : index
    %1 = vector.load %arg2[%c0_1, %c0_2] : memref<128x256xf32, #tpu.memory_space<vmem>>, vector<128x256xf32>
    %cst = arith.constant dense<0.000000e+00> : vector<8x256xf32>
    %2 = tpu.matmul %0, %1, %cst {dimension_numbers = #tpu.dot_dimension_numbers<[1], [0], [0], [1], [0, 0, 1, 1], [], []>, precision = #tpu.contract_precision<fp32>} : vector<8x128xf32>, vector<128x256xf32>, vector<8x256xf32> -> vector<8x256xf32>
    %c0_3 = arith.constant 0 : index
    %c0_4 = arith.constant 0 : index
    %3 = vector.load %arg3[%c0_3, %c0_4] : memref<1x256xf32, #tpu.memory_space<vmem>>, vector<1x256xf32>
    %4 = vector.broadcast %3 : vector<1x256xf32> to vector<8x256xf32>
    %5 = arith.addf %2, %4 : vector<8x256xf32>
    %6 = vector.extract_strided_slice %5 {offsets = [0, 0], sizes = [8, 128], strides = [1, 1]} : vector<8x256xf32> to vector<8x128xf32>
    %7 = vector.extract_strided_slice %5 {offsets = [0, 128], sizes = [8, 128], strides = [1, 1]} : vector<8x256xf32> to vector<8x128xf32>
    %cst_5 = arith.constant 5.000000e-01 : f32
    %8 = vector.broadcast %cst_5 : f32 to vector<8x128xf32>
    %9 = arith.mulf %8, %7 : vector<8x128xf32>
    %cst_6 = arith.constant 0.707106769 : f32
    %10 = vector.broadcast %cst_6 : f32 to vector<8x128xf32>
    %11 = arith.mulf %7, %10 : vector<8x128xf32>
    %12 = math.erf %11 : vector<8x128xf32>
    %cst_7 = arith.constant 1.000000e+00 : f32
    %13 = vector.broadcast %cst_7 : f32 to vector<8x128xf32>
    %14 = arith.addf %13, %12 : vector<8x128xf32>
    %15 = arith.mulf %9, %14 : vector<8x128xf32>
    %16 = arith.mulf %6, %15 : vector<8x128xf32>
    %c0_8 = arith.constant 0 : index
    %c0_9 = arith.constant 0 : index
    %17 = vector.load %arg4[%c0_8, %c0_9] : memref<128x128xf32, #tpu.memory_space<vmem>>, vector<128x128xf32>
    %cst_10 = arith.constant dense<0.000000e+00> : vector<8x128xf32>
    %18 = tpu.matmul %16, %17, %cst_10 {dimension_numbers = #tpu.dot_dimension_numbers<[1], [0], [0], [1], [0, 0, 1, 1], [], []>, precision = #tpu.contract_precision<fp32>} : vector<8x128xf32>, vector<128x128xf32>, vector<8x128xf32> -> vector<8x128xf32>
    %c0_11 = arith.constant 0 : index
    %c0_12 = arith.constant 0 : index
    %19 = vector.load %arg5[%c0_11, %c0_12] : memref<1x128xf32, #tpu.memory_space<vmem>>, vector<1x128xf32>
    %20 = vector.broadcast %19 : vector<1x128xf32> to vector<8x128xf32>
    %21 = arith.addf %18, %20 : vector<8x128xf32>
    %cst_13 = arith.constant 5.000000e-01 : f32
    %22 = vector.broadcast %cst_13 : f32 to vector<8x128xf32>
    %23 = arith.mulf %22, %21 : vector<8x128xf32>
    %cst_14 = arith.constant 0.707106769 : f32
    %24 = vector.broadcast %cst_14 : f32 to vector<8x128xf32>
    %25 = arith.mulf %21, %24 : vector<8x128xf32>
    %26 = math.erf %25 : vector<8x128xf32>
    %cst_15 = arith.constant 1.000000e+00 : f32
    %27 = vector.broadcast %cst_15 : f32 to vector<8x128xf32>
    %28 = arith.addf %27, %26 : vector<8x128xf32>
    %29 = arith.mulf %23, %28 : vector<8x128xf32>
    %c0_16 = arith.constant 0 : index
    %c0_17 = arith.constant 0 : index
    %30 = vector.load %arg6[%c0_16, %c0_17] : memref<128x128xf32, #tpu.memory_space<vmem>>, vector<128x128xf32>
    %cst_18 = arith.constant dense<0.000000e+00> : vector<8x128xf32>
    %31 = tpu.matmul %29, %30, %cst_18 {dimension_numbers = #tpu.dot_dimension_numbers<[1], [0], [0], [1], [0, 0, 1, 1], [], []>, precision = #tpu.contract_precision<fp32>} : vector<8x128xf32>, vector<128x128xf32>, vector<8x128xf32> -> vector<8x128xf32>
    %c0_19 = arith.constant 0 : index
    %c0_20 = arith.constant 0 : index
    %32 = vector.load %arg7[%c0_19, %c0_20] : memref<1x128xf32, #tpu.memory_space<vmem>>, vector<1x128xf32>
    %33 = vector.broadcast %32 : vector<1x128xf32> to vector<8x128xf32>
    %34 = arith.addf %31, %33 : vector<8x128xf32>
    %c0_21 = arith.constant 0 : index
    %c0_22 = arith.constant 0 : index
    %35 = vector.load %arg8[%c0_21, %c0_22] : memref<8x128xf32, #tpu.memory_space<vmem>>, vector<8x128xf32>
    tpu.vector_store %arg8[%c0_21, %c0_22], %34 {strides = array<i32>} : memref<8x128xf32, #tpu.memory_space<vmem>>, vector<8x128xf32>,
    return
  }
  func.func @transform_0(%arg0: i32) -> (i32, i32) {
    %c0_i32 = arith.constant 0 : i32
    %c0_i32_0 = arith.constant 0 : i32
    return %arg0, %c0_i32 : i32, i32
  }
  func.func @transform_1(%arg0: i32) -> (i32, i32) {
    %c0_i32 = arith.constant 0 : i32
    %c0_i32_0 = arith.constant 0 : i32
    %c0_i32_1 = arith.constant 0 : i32
    return %c0_i32, %c0_i32_0 : i32, i32
  }
  func.func @transform_2(%arg0: i32) -> (i32, i32) {
    %c0_i32 = arith.constant 0 : i32
    %c0_i32_0 = arith.constant 0 : i32
    %c0_i32_1 = arith.constant 0 : i32
    return %c0_i32, %c0_i32_0 : i32, i32
  }
  func.func @transform_3(%arg0: i32) -> (i32, i32) {
    %c0_i32 = arith.constant 0 : i32
    %c0_i32_0 = arith.constant 0 : i32
    %c0_i32_1 = arith.constant 0 : i32
    return %c0_i32, %c0_i32_0 : i32, i32
  }
  func.func @transform_4(%arg0: i32) -> (i32, i32) {
    %c0_i32 = arith.constant 0 : i32
    %c0_i32_0 = arith.constant 0 : i32
    %c0_i32_1 = arith.constant 0 : i32
    return %c0_i32, %c0_i32_0 : i32, i32
  }
  func.func @transform_5(%arg0: i32) -> (i32, i32) {
    %c0_i32 = arith.constant 0 : i32
    %c0_i32_0 = arith.constant 0 : i32
    %c0_i32_1 = arith.constant 0 : i32
    return %c0_i32, %c0_i32_0 : i32, i32
  }
  func.func @transform_6(%arg0: i32) -> (i32, i32) {
    %c0_i32 = arith.constant 0 : i32
    %c0_i32_0 = arith.constant 0 : i32
    %c0_i32_1 = arith.constant 0 : i32
    return %c0_i32, %c0_i32_0 : i32, i32
  }
  func.func @transform_7(%arg0: i32) -> (i32, i32) {
    %c0_i32 = arith.constant 0 : i32
    %c0_i32_0 = arith.constant 0 : i32
    return %arg0, %c0_i32 : i32, i32
  }
}

</mosaic_0001>

<bundles_post_ra>
// kernel: tpu_custom_call.1
= control target key start
LH: loop header
LB: loop body
LE: loop exit
PB: predicated region body
PF: predicated region fallthrough
CT: control target
= control target key end

     0   :  { %12 = vsyncpa [#allocation3], 0  ;;  %s4540_s0 = inlined_call_operand.hbm [shape: f32[8,128], index: 0, kind: input, shape index: {}]   ;;  %s4541_s1 = inlined_call_operand.hbm [shape: f32[128,256], index: 1, kind: input, shape index: {}]   ;;  %s4542_s2 = inlined_call_operand.vmem [shape: f32[1,256], index: 2, kind: input, shape index: {}]   ;;  %s4543_s3 = inlined_call_operand.hbm [shape: f32[128,128], index: 3, kind: input, shape index: {}]   ;;  %s4544_s4 = inlined_call_operand.vmem [shape: f32[1,128], index: 4, kind: input, shape index: {}]   ;;  %s4545_s5 = inlined_call_operand.hbm [shape: f32[128,128], index: 5, kind: input, shape index: {}]   ;;  %s4546_s6 = inlined_call_operand.vmem [shape: f32[1,128], index: 6, kind: input, shape index: {}]   ;;  %s4547_s7 = inlined_call_operand.hbm [shape: f32[8,128], index: 7, kind: output, shape index: {}]  }
   0x1   :  { %13 = vsyncpa [#allocation6], 0 }
   0x2   :  { %14 = vsyncpa [#allocation9], 0 }
   0x3   :  { %15 = vsyncpa [#allocation4], 0  ;;  %s3611_s24 = smov [#allocation5]   ;;  %s3493_s28 = scalar_lea.hbm %s4541_s1, 4096 }
   0x4   :  { %s31_s25 = sshll.u32 %s3611_s24, 4  ;;  %p3494_p0 = scmp.ne.s32.totalorder %s4541_s1, %s3493_s28  ;;  %s32_s25 = int_to_ptr.vmem [resolvable:$true] %s31_s25 }
   0x5   :  { %p3497_p1 = scmp.lt.u32.totalorder %s3493_s28, %s4541_s1 }
   0x7   :  { %p3499_p2 = pnand %p3497_p1, %p3494_p0 }
   0x9   :  { %3502 = shalt.err (!%p3499_p2)
}
   0xa   :  { %s3503_s10 = scalar_lea.vmem %s32_s25, 4096  ;;  %p3508_p4 = scmp.lt.s32.totalorder %s32_s25, %s32_s25 }
   0xb   :  { %p3504_p3 = scmp.ne.s32.totalorder %s32_s25, %s3503_s10  ;;  %p3509_p5 = scmp.lt.s32.totalorder %s3503_s10, %s3503_s10 }
   0xd   :  { %p3510_p6 = por %p3509_p5, %p3508_p4 }
   0xf   :  { %p3511_p7 = pnand %p3510_p6, %p3504_p3 }
  0x11   :  { %3514 = shalt.err (!%p3511_p7)
}
  0x12   :  { %s3612_s11 = smov 256   ;;  %s3613_s12 = smov 16  }
  0x13   :  { %37 = dma.hbm_to_vmem [thread:$0]  %s4541_s1, 4096, %s32_s25, [#allocation6], %s3612_s11, %s3612_s11, %s3613_s12  }
  0x14   :  { %s3614_s15 = smov [#allocation2]   ;;  %s3615_s17 = smov [#allocation7]  }
  0x15   :  { %s22_s16 = sshll.u32 %s3614_s15, 4  ;;  %s45_s18 = sshll.u32 %s3615_s17, 4  ;;  %s23_s16 = int_to_ptr.vmem [resolvable:$true] %s22_s16  ;;  %s46_s18 = int_to_ptr.vmem [resolvable:$true] %s45_s18 }
  0x16   :  { %s3515_s21 = scalar_lea.hbm %s4540_s0, 128 }
  0x17   :  { %p3516_p8 = scmp.ne.s32.totalorder %s4540_s0, %s3515_s21  ;;  %p3519_p9 = scmp.lt.u32.totalorder %s3515_s21, %s4540_s0 }
  0x19   :  { %p3521_p10 = pnand %p3519_p9, %p3516_p8 }
  0x1b   :  { %3524 = shalt.err (!%p3521_p10)
}
  0x1c   :  { %s3525_s1 = scalar_lea.vmem %s23_s16, 128  ;;  %p3530_p12 = scmp.lt.s32.totalorder %s23_s16, %s23_s16 }
  0x1d   :  { %p3526_p11 = scmp.ne.s32.totalorder %s23_s16, %s3525_s1  ;;  %p3531_p13 = scmp.lt.s32.totalorder %s3525_s1, %s3525_s1 }
  0x1f   :  { %p3532_p0 = por %p3531_p13, %p3530_p12 }
  0x21   :  { %p3533_p1 = pnand %p3532_p0, %p3526_p11 }
  0x23   :  { %3536 = shalt.err (!%p3533_p1)
}
  0x24   :  { %25 = dma.hbm_to_vmem [thread:$0]  %s4540_s0, 128, %s23_s16, [#allocation3]  }
  0x25   :  { %s3537_s30 = scalar_lea.hbm %s4543_s3, 2048 }
  0x26   :  { %p3538_p2 = scmp.ne.s32.totalorder %s4543_s3, %s3537_s30  ;;  %p3541_p3 = scmp.lt.u32.totalorder %s3537_s30, %s4543_s3 }
  0x28   :  { %p3543_p4 = pnand %p3541_p3, %p3538_p2 }
  0x2a   :  { %3546 = shalt.err (!%p3543_p4)
}
  0x2b   :  { %s3547_s12 = scalar_lea.vmem %s46_s18, 2048  ;;  %p3552_p6 = scmp.lt.s32.totalorder %s46_s18, %s46_s18 }
  0x2c   :  { %p3548_p5 = scmp.ne.s32.totalorder %s46_s18, %s3547_s12  ;;  %p3553_p7 = scmp.lt.s32.totalorder %s3547_s12, %s3547_s12 }
  0x2e   :  { %p3554_p8 = por %p3553_p7, %p3552_p6 }
  0x30   :  { %p3555_p9 = pnand %p3554_p8, %p3548_p5 }
  0x32   :  { %3558 = shalt.err (!%p3555_p9)
}
  0x33   :  { %s3616_s0 = smov 128   ;;  %s3617_s13 = smov 8  }
  0x34   :  { %51 = dma.hbm_to_vmem [thread:$0]  %s4543_s3, 2048, %s46_s18, [#allocation6], %s3616_s0, %s3616_s0, %s3617_s13  }
  0x35   :  { %s3618_s16 = smov [#allocation8]   ;;  %s3559_s21 = scalar_lea.hbm %s4545_s5, 2048 }
  0x36   :  { %s59_s17 = sshll.u32 %s3618_s16, 4  ;;  %p3560_p10 = scmp.ne.s32.totalorder %s4545_s5, %s3559_s21  ;;  %s60_s17 = int_to_ptr.vmem [resolvable:$true] %s59_s17 }
  0x37   :  { %p3563_p11 = scmp.lt.u32.totalorder %s3559_s21, %s4545_s5 }
  0x39   :  { %p3565_p12 = pnand %p3563_p11, %p3560_p10 }
  0x3b   :  { %3568 = shalt.err (!%p3565_p12)
}
  0x3c   :  { %s3569_s1 = scalar_lea.vmem %s60_s17, 2048  ;;  %p3574_p0 = scmp.lt.s32.totalorder %s60_s17, %s60_s17 }
  0x3d   :  { %p3570_p13 = scmp.ne.s32.totalorder %s60_s17, %s3569_s1  ;;  %p3575_p1 = scmp.lt.s32.totalorder %s3569_s1, %s3569_s1 }
  0x3f   :  { %p3576_p2 = por %p3575_p1, %p3574_p0 }
  0x41   :  { %p3577_p3 = pnand %p3576_p2, %p3570_p13 }
  0x43   :  { %3580 = shalt.err (!%p3577_p3)
}
  0x44   :  { %65 = dma.hbm_to_vmem [thread:$0]  %s4545_s5, 2048, %s60_s17, [#allocation9], %s3616_s0, %s3616_s0, %s3617_s13  }
  0x45   :  { %3603 = dma.done.wait [#allocation3], 128  }
  0x46   :  { %3604 = vsyncadd [#allocation3], 4294967168 }
  0x47   :  { %3605 = dma.done.wait [#allocation6], 6144  }
  0x48   :  { %3606 = vsyncadd [#allocation6], 4294961152 }
  0x49   :  { %3607 = dma.done.wait [#allocation9], 2048  }
  0x4a   :  { %3608 = vsyncadd [#allocation9], 4294965248  ;;  %v4548_v0 = vmov 0.0   ;;  %v82_v1 = vld [vmem:[#allocation5 + $0x8] sm:$0xff]  ;;  %v84_v2 = vld [vmem:[#allocation5 + $0x18] sm:$0xff]  ;;  %vm3621_vm0 = vmmov 0  }
  0x4b   :  { %221 = vmatprep.mubr.f32.mxu1 %v4548_v0  ;;  %698 = vmatprep.mubr.f32.mxu0 %v4548_v0  ;;  %v81_v3 = vld [vmem:[#allocation5] sm:$0xff]  ;;  %v125_v4 = vand.u32 4294901760, %v82_v1  ;;  %v129_v5 = vand.u32 4294901760, %v84_v2  ;;  %v83_v6 = vld [vmem:[#allocation5 + $0x10] sm:$0xff]  ;;  %v86_v8 = vld [vmem:[#allocation5 + $0x28] sm:$0xff]  ;;  %s3622_s29 = smov [#allocation10]  }
  0x4c   :  { %v127_v7 = vand.u32 4294901760, %v81_v3  ;;  %v88_v9 = vld [vmem:[#allocation5 + $0x38] sm:$0xff]  ;;  %v131_v10 = vand.u32 4294901760, %v83_v6  ;;  %v133_v11 = vand.u32 4294901760, %v86_v8  ;;  %v85_v13 = vld [vmem:[#allocation5 + $0x20] sm:$0xff]  ;;  %v87_v14 = vld [vmem:[#allocation5 + $0x30] sm:$0xff] }
  0x4d   :  { %v137_v12 = vand.u32 4294901760, %v88_v9  ;;  %v90_v15 = vld [vmem:[#allocation5 + $0x48] sm:$0xff]  ;;  %v3713_v16 = vpack.c.bf16 %v129_v5, %v125_v4  ;;  %v92_v17 = vld [vmem:[#allocation5 + $0x58] sm:$0xff]  ;;  %v89_v18 = vld [vmem:[#allocation5 + $0x40] sm:$0xff]  ;;  %v3715_v20 = vsub.f32 %v82_v1, %v125_v4  ;;  %v3722_v25 = vsub.f32 %v84_v2, %v129_v5  ;;  %s2326_s30 = sshll.u32 %s3622_s29, 4  ;;  %s2327_s30 = int_to_ptr.vmem [resolvable:$true] %s2326_s30 }
  0x4e   :  { %v91_v19 = vld [vmem:[#allocation5 + $0x50] sm:$0xff]  ;;  %v3717_v21 = vpack.c.bf16 %v131_v10, %v127_v7  ;;  %v94_v23 = vld [vmem:[#allocation5 + $0x68] sm:$0xff]  ;;  %v96_v24 = vld [vmem:[#allocation5 + $0x78] sm:$0xff]  ;;  %v135_v26 = vand.u32 4294901760, %v85_v13  ;;  %v139_v27 = vand.u32 4294901760, %v87_v14  ;;  %v141_v28 = vand.u32 4294901760, %v90_v15  ;;  %p3586_p5 = scmp.lt.s32.totalorder %s2327_s30, %s2327_s30 }
  0x4f   :  { %v3719_v22 = vpack.c.bf16 %v137_v12, %v133_v11  ;;  %2964 = vmatprep.subr.bf16.mxu1 %v3713_v16  ;;  %3060 = vmatprep.subr.bf16.mxu0 %v3713_v16  ;;  %v3726_v29 = vsub.f32 %v81_v3, %v127_v7  ;;  %v145_v30 = vand.u32 4294901760, %v92_v17  ;;  %v143_v31 = vand.u32 4294901760, %v89_v18  ;;  %v93_v37 = vld [vmem:[#allocation5 + $0x60] sm:$0xff]  ;;  %v95_v38 = vld [vmem:[#allocation5 + $0x70] sm:$0xff]  ;;  %v98_v39 = vld [vmem:[#allocation5 + $0x88] sm:$0xff]  ;;  %s3581_s8 = scalar_lea.vmem %s2327_s30, 128 }
  0x50   :  { %4595 = vst [vmem:[#allocation15_spill] sm:$0xff] %v3717_v21  ;;  %2966 = vmatpush1.bf16.msra.mxu1 %v3717_v21  ;;  %3062 = vmatpush1.bf16.msra.mxu0 %v3717_v21  ;;  %v147_v32 = vand.u32 4294901760, %v91_v19  ;;  %v3729_v33 = vsub.f32 %v83_v6, %v131_v10  ;;  %v3733_v34 = vpack.c.bf16 %v139_v27, %v135_v26  ;;  %v149_v35 = vand.u32 4294901760, %v94_v23  ;;  %v100_v44 = vld [vmem:[#allocation5 + $0x98] sm:$0xff]  ;;  %v97_v45 = vld [vmem:[#allocation5 + $0x80] sm:$0xff]  ;;  %v99_v46 = vld [vmem:[#allocation5 + $0x90] sm:$0xff]  ;;  %p3582_p4 = scmp.ne.s32.totalorder %s2327_s30, %s3581_s8  ;;  %p3587_p6 = scmp.lt.s32.totalorder %s3581_s8, %s3581_s8 }
  0x51   :  { %4596 = vst [vmem:[#allocation16_spill] sm:$0xff] %v3719_v22  ;;  %2968 = vmatprep.subr.bf16.mxu1 %v3719_v22  ;;  %3064 = vmatprep.subr.bf16.mxu0 %v3719_v22  ;;  %v153_v36 = vand.u32 4294901760, %v96_v24  ;;  %v3735_v40 = vsub.f32 %v86_v8, %v133_v11  ;;  %v3737_v41 = vsub.f32 %v88_v9, %v137_v12  ;;  %v102_v51 = vld [vmem:[#allocation5 + $0xa8] sm:$0xff]  ;;  %v151_v53 = vand.u32 4294901760, %v93_v37  ;;  %v104_v60 = vld [vmem:[#allocation5 + $0xb8] sm:$0xff]  ;;  %v101_v61 = vld [vmem:[#allocation5 + $0xa0] sm:$0xff] }
  0x52   :  { %4597 = vst [vmem:[#allocation17_spill] sm:$0xff] %v3733_v34  ;;  %v3739_v42 = vsub.f32 %v85_v13, %v135_v26  ;;  %v3741_v43 = vpack.c.bf16 %v145_v30, %v141_v28  ;;  %v3743_v47 = vsub.f32 %v87_v14, %v139_v27  ;;  %v3745_v48 = vsub.f32 %v90_v15, %v141_v28  ;;  %v103_v3 = vld [vmem:[#allocation5 + $0xb0] sm:$0xff]  ;;  %v106_v4 = vld [vmem:[#allocation5 + $0xc8] sm:$0xff]  ;;  %v108_v5 = vld [vmem:[#allocation5 + $0xd8] sm:$0xff]  ;;  %p3588_p7 = por %p3587_p6, %p3586_p5 }
  0x53   :  { %v3747_v49 = vsub.f32 %v92_v17, %v145_v30  ;;  %v3749_v50 = vpack.c.bf16 %v147_v32, %v143_v31  ;;  %v3753_v52 = vsub.f32 %v89_v18, %v143_v31  ;;  %v155_v54 = vand.u32 4294901760, %v95_v38  ;;  %v105_v10 = vld [vmem:[#allocation5 + $0xc0] sm:$0xff]  ;;  %v107_v15 = vld [vmem:[#allocation5 + $0xd0] sm:$0xff]  ;;  %v110_v30 = vld [vmem:[#allocation5 + $0xe8] sm:$0xff] }
  0x54   :  { %4598 = vst [vmem:[#allocation18_spill] sm:$0xff] %v3739_v42  ;;  %4599 = vst [vmem:[#allocation19_spill] sm:$0xff] %v3741_v43  ;;  %2970 = vmatpush1.bf16.msra.mxu1 %v3733_v34  ;;  %3066 = vmatpush1.bf16.msra.mxu0 %v3733_v34  ;;  %v157_v55 = vand.u32 4294901760, %v98_v39  ;;  %v3757_v56 = vpack.c.bf16 %v153_v36, %v149_v35  ;;  %v161_v57 = vand.u32 4294901760, %v100_v44  ;;  %v159_v58 = vand.u32 4294901760, %v97_v45  ;;  %v112_v31 = vld [vmem:[#allocation5 + $0xf8] sm:$0xff]  ;;  %p3589_p8 = pnand %p3588_p7, %p3582_p4 }
  0x55   :  { %4600 = vst [vmem:[#allocation20_spill] sm:$0xff] %v3743_v47  ;;  %4601 = vst [vmem:[#allocation21_spill] sm:$0xff] %v3749_v50  ;;  %2972 = vmatprep.subr.bf16.mxu1 %v3741_v43  ;;  %3068 = vmatprep.subr.bf16.mxu0 %v3741_v43  ;;  %v163_v59 = vand.u32 4294901760, %v99_v46  ;;  %v3759_v62 = vsub.f32 %v91_v19, %v147_v32  ;;  %v3761_v63 = vsub.f32 %v94_v23, %v149_v35  ;;  %v109_v32 = vld [vmem:[#allocation5 + $0xe0] sm:$0xff] }
  0x56   :  { %4602 = vst [vmem:[#allocation22_spill] sm:$0xff] %v3753_v52  ;;  %4603 = vst [vmem:[#allocation23_spill] sm:$0xff] %v3757_v56  ;;  %v3763_v1 = vsub.f32 %v96_v24, %v153_v36  ;;  %v165_v2 = vand.u32 4294901760, %v102_v51  ;;  %v3765_v6 = vpack.c.bf16 %v155_v54, %v151_v53  ;;  %v3767_v7 = vsub.f32 %v93_v37, %v151_v53 }
  0x57   :  { %4604 = vst [vmem:[#allocation24_spill] sm:$0xff] %v3759_v62  ;;  %v3769_v8 = vsub.f32 %v95_v38, %v155_v54  ;;  %v3771_v9 = vsub.f32 %v98_v39, %v157_v55  ;;  %v3775_v11 = vpack.c.bf16 %v161_v57, %v157_v55  ;;  %v3777_v12 = vsub.f32 %v100_v44, %v161_v57  ;;  %v111_v39 = vld [vmem:[#allocation5 + $0xf0] sm:$0xff]  ;;  %v80_v44 = vld [vmem:[#allocation2] sm:$0xff] }
  0x58   :  { %4605 = vst [vmem:[#allocation25_spill] sm:$0xff] %v3765_v6  ;;  %2974 = vmatpush1.bf16.msra.mxu1 %v3749_v50  ;;  %3070 = vmatpush1.bf16.msra.mxu0 %v3749_v50  ;;  %v169_v13 = vand.u32 4294901760, %v104_v60  ;;  %v167_v14 = vand.u32 4294901760, %v101_v61  ;;  %v3781_v17 = vpack.c.bf16 %v163_v59, %v159_v58  ;;  %v171_v18 = vand.u32 4294901760, %v103_v3 }
  0x59   :  { %4606 = vst [vmem:[#allocation26_spill] sm:$0xff] %v3775_v11  ;;  %2976 = vmatprep.subr.bf16.mxu1 %v3757_v56  ;;  %3072 = vmatprep.subr.bf16.mxu0 %v3757_v56  ;;  %v173_v19 = vand.u32 4294901760, %v106_v4  ;;  %v177_v23 = vand.u32 4294901760, %v108_v5  ;;  %v3783_v24 = vsub.f32 %v97_v45, %v159_v58  ;;  %v3785_v26 = vsub.f32 %v99_v46, %v163_v59 }
  0x5a   :  { %4607 = vst [vmem:[#allocation27_spill] sm:$0xff] %v3781_v17  ;;  %v3787_v27 = vsub.f32 %v102_v51, %v165_v2  ;;  %v175_v28 = vand.u32 4294901760, %v105_v10  ;;  %v3789_v35 = vpack.c.bf16 %v169_v13, %v165_v2  ;;  %v3791_v36 = vsub.f32 %v104_v60, %v169_v13 }
  0x5b   :  { %v3793_v37 = vsub.f32 %v101_v61, %v167_v14  ;;  %v179_v38 = vand.u32 4294901760, %v107_v15  ;;  %v3797_v45 = vpack.c.bf16 %v171_v18, %v167_v14  ;;  %v3799_v46 = vsub.f32 %v103_v3, %v171_v18 }
  0x5c   :  { %4608 = vst [vmem:[#allocation28_spill] sm:$0xff] %v3787_v27  ;;  %4609 = vst [vmem:[#allocation29_spill] sm:$0xff] %v3789_v35  ;;  %2978 = vmatpush1.bf16.msra.mxu1 %v3765_v6  ;;  %3074 = vmatpush1.bf16.msra.mxu0 %v3765_v6  ;;  %v3801_v51 = vpack.c.bf16 %v177_v23, %v173_v19  ;;  %v3805_v53 = vsub.f32 %v106_v4, %v173_v19  ;;  %v181_v54 = vand.u32 4294901760, %v110_v30 }
  0x5d   :  { %4610 = vst [vmem:[#allocation30_spill] sm:$0xff] %v3797_v45  ;;  %2980 = vmatprep.subr.bf16.mxu1 %v3775_v11  ;;  %3076 = vmatprep.subr.bf16.mxu0 %v3775_v11  ;;  %v185_v55 = vand.u32 4294901760, %v112_v31  ;;  %v183_v57 = vand.u32 4294901760, %v109_v32  ;;  %v187_v58 = vand.u32 4294901760, %v111_v39  ;;  %v235_v59 = vand.u32 4294901760, %v3715_v20 }
  0x5e   :  { %4611 = vst [vmem:[#allocation31_spill] sm:$0xff] %v3801_v51  ;;  %4612 = vst [vmem:[#allocation32_spill] sm:$0xff] %v3805_v53  ;;  %v247_v60 = vand.u32 4294901760, %v3722_v25  ;;  %v3809_v61 = vand.u32 4294901760, %v80_v44  ;;  %v3811_v2 = vsub.f32 %v108_v5, %v177_v23  ;;  %v3813_v3 = vpack.c.bf16 %v179_v38, %v175_v28 }
  0x5f   :  { %v3815_v13 = vsub.f32 %v105_v10, %v175_v28  ;;  %v3817_v14 = vsub.f32 %v107_v15, %v179_v38  ;;  %v3821_v4 = vsub.f32 %v110_v30, %v181_v54  ;;  %v236_v18 = vsub.f32 %v3715_v20, %v235_v59 }
  0x60   :  { %4613 = vst [vmem:[#allocation33_spill] sm:$0xff] %v3813_v3  ;;  %2982 = vmatpush1.bf16.msra.mxu1 %v3781_v17  ;;  %3078 = vmatpush1.bf16.msra.mxu0 %v3781_v17  ;;  %v248_v19 = vsub.f32 %v3722_v25, %v247_v60  ;;  %v241_v0 = vand.u32 4294901760, %v3726_v29  ;;  %v3828_v5 = vpack.c.bf16 %v185_v55, %v181_v54  ;;  %v253_v15 = vand.u32 4294901760, %v3729_v33 }
  0x61   :  { %2984 = vmatprep.subr.bf16.mxu1 %v3789_v35  ;;  %3080 = vmatprep.subr.bf16.mxu0 %v3789_v35  ;;  %v3831_v10 = vsub.f32 %v80_v44, %v3809_v61  ;;  %v259_v23 = vand.u32 4294901760, %v3735_v40  ;;  %v3835_v28 = vsub.f32 %v112_v31, %v185_v55  ;;  %v3837_v30 = vpack.c.bf16 %v187_v58, %v183_v57 }
  0x62   :  { %4614 = vst [vmem:[#allocation34_spill] sm:$0xff] %v3828_v5  ;;  %v242_v38 = vsub.f32 %v3726_v29, %v241_v0  ;;  %v271_v17 = vand.u32 4294901760, %v3737_v41  ;;  %v3841_v11 = vsub.f32 %v109_v32, %v183_v57  ;;  %v254_v35 = vsub.f32 %v3729_v33, %v253_v15 }
  0x63   :  { %4615 = vst [vmem:[#allocation35_spill] sm:$0xff] %v3831_v10  ;;  %4616 = vst [vmem:[#allocation36_spill] sm:$0xff] %v3837_v30  ;;  %v224_v54 = vand.u32 4294901760, %v3831_v10  ;;  %v260_v44 = vsub.f32 %v3735_v40, %v259_v23  ;;  %v3848_v31 = vsub.f32 %v111_v39, %v187_v58  ;;  %v237_v55 = vand.u32 4294901760, %v236_v18 }
  0x64   :  { %2986 = vmatpush1.bf16.msra.mxu1 %v3797_v45  ;;  %3082 = vmatpush1.bf16.msra.mxu0 %v3797_v45  ;;  %v249_v6 = vand.u32 4294901760, %v248_v19  ;;  %v272_v56 = vsub.f32 %v3737_v41, %v271_v17  ;;  %v3091_v32 = vpack.c.bf16 %v247_v60, %v235_v59  ;;  %v243_v50 = vand.u32 4294901760, %v242_v38 }
  0x65   :  { %2988 = vmatprep.subr.bf16.mxu1 %v3801_v51  ;;  %3084 = vmatprep.subr.bf16.mxu0 %v3801_v51  ;;  %v225_v57 = vsub.f32 %v3831_v10, %v224_v54  ;;  %v265_v43 = vand.u32 4294901760, %v3739_v42  ;;  %v255_v34 = vand.u32 4294901760, %v254_v35  ;;  %v277_v22 = vand.u32 4294901760, %v3743_v47 }
  0x66   :  { %v283_v39 = vand.u32 4294901760, %v3745_v48  ;;  %v295_v58 = vand.u32 4294901760, %v3747_v49  ;;  %v3093_v18 = vpack.c.bf16 %v253_v15, %v241_v0  ;;  %v261_v19 = vand.u32 4294901760, %v260_v44 }
  0x67   :  { %v273_v45 = vand.u32 4294901760, %v272_v56  ;;  %v289_v21 = vand.u32 4294901760, %v3753_v52  ;;  %v2995_v59 = vpack.c.bf16 %v249_v6, %v237_v55  ;;  %v266_v60 = vsub.f32 %v3739_v42, %v265_v43 }
  0x68   :  { %2990 = vmatpush1.bf16.msra.mxu1 %v3813_v3  ;;  %3086 = vmatpush1.bf16.msra.mxu0 %v3813_v3  ;;  %v278_v35 = vsub.f32 %v3743_v47, %v277_v22  ;;  %v301_v38 = vand.u32 4294901760, %v3759_v62  ;;  %v3095_v0 = vpack.c.bf16 %v271_v17, %v259_v23  ;;  %v284_v56 = vsub.f32 %v3745_v48, %v283_v39 }
  0x69   :  { %2992 = vmatprep.subr.bf16.mxu1 %v3828_v5  ;;  %3088 = vmatprep.subr.bf16.mxu0 %v3828_v5  ;;  %v296_v15 = vsub.f32 %v3747_v49, %v295_v58  ;;  %v226_v44 = vand.u32 4294901760, %v225_v57  ;;  %v2997_v10 = vpack.c.bf16 %v255_v34, %v243_v50  ;;  %v290_v3 = vsub.f32 %v3753_v52, %v289_v21 }
  0x6a   :  { %v302_v6 = vsub.f32 %v3759_v62, %v301_v38  ;;  %v2999_v55 = vpack.c.bf16 %v273_v45, %v261_v19  ;;  %v3097_v51 = vpack.c.bf16 %v277_v22, %v265_v43  ;;  %v307_v47 = vand.u32 4294901760, %v3761_v63 }
  0x6b   :  { %v319_v42 = vand.u32 4294901760, %v3763_v1  ;;  %v267_v17 = vand.u32 4294901760, %v266_v60  ;;  %v279_v23 = vand.u32 4294901760, %v278_v35  ;;  %v285_v5 = vand.u32 4294901760, %v284_v56 }
  0x6c   :  { %2994 = vmatpush1.bf16.msra.mxu1 %v3837_v30  ;;  %3090 = vmatpush1.bf16.msra.mxu0 %v3837_v30  ;;  %v313_v57 = vand.u32 4294901760, %v3767_v7  ;;  %v297_v34 = vand.u32 4294901760, %v296_v15  ;;  %v308_v50 = vsub.f32 %v3761_v63, %v307_v47  ;;  %v325_v43 = vand.u32 4294901760, %v3769_v8 }
  0x6d   :  { %2996 = vmatprep.subr.bf16.mxu1 %v2995_v59  ;;  %3092 = vmatprep.subr.bf16.mxu0 %v3091_v32  ;;  %v320_v22 = vsub.f32 %v3763_v1, %v319_v42  ;;  %v3099_v45 = vpack.c.bf16 %v295_v58, %v283_v39  ;;  %v291_v19 = vand.u32 4294901760, %v290_v3  ;;  %v303_v62 = vand.u32 4294901760, %v302_v6 }
  0x6e   :  { %v331_v52 = vand.u32 4294901760, %v3771_v9  ;;  %v3101_v60 = vpack.c.bf16 %v301_v38, %v289_v21  ;;  %v309_v35 = vand.u32 4294901760, %v308_v50  ;;  %v314_v59 = vsub.f32 %v3767_v7, %v313_v57 }
  0x6f   :  { %227 = vmatmul.mubr.f32.vlgmr.msra.gmra.mrb[0].mxu1 %v226_v44  ;;  %702 = vmatmul.mubr.f32.vlgmr.msra.gmra.mrb[0].mxu0 %v224_v54  ;;  %v321_v56 = vand.u32 4294901760, %v320_v22  ;;  %v3001_v32 = vpack.c.bf16 %v279_v23, %v267_v17  ;;  %v326_v15 = vsub.f32 %v3769_v8, %v325_v43  ;;  %v343_v30 = vand.u32 4294901760, %v3777_v12 }
  0x70   :  { %2998 = vmatpush1.bf16.msra.mxu1 %v2997_v10  ;;  %3094 = vmatpush1.bf16.msra.mxu0 %v3093_v18  ;;  %v337_v39 = vand.u32 4294901760, %v3783_v24  ;;  %v3003_v3 = vpack.c.bf16 %v297_v34, %v285_v5  ;;  %v332_v58 = vsub.f32 %v3771_v9, %v331_v52  ;;  %v349_v21 = vand.u32 4294901760, %v3785_v26 }
  0x71   :  { %3000 = vmatprep.subr.bf16.mxu1 %v2999_v55  ;;  %3096 = vmatprep.subr.bf16.mxu0 %v3095_v0  ;;  %v355_v54 = vand.u32 4294901760, %v3787_v27  ;;  %v3005_v38 = vpack.c.bf16 %v303_v62, %v291_v19  ;;  %v344_v10 = vsub.f32 %v3777_v12, %v343_v30  ;;  %v4617_v44 = vmov 0.0  }
  0x72   :  { %v338_v18 = vsub.f32 %v3783_v24, %v337_v39  ;;  %457 = vmatprep.mubr.f32.mxu1 %v4617_v44  ;;  %868 = vmatprep.mubr.f32.mxu0 %v4617_v44  ;;  %v3007_v6 = vpack.c.bf16 %v321_v56, %v309_v35  ;;  %v3103_v17 = vpack.c.bf16 %v319_v42, %v307_v47  ;;  %v315_v55 = vand.u32 4294901760, %v314_v59 }
  0x73   :  { %v350_v5 = vsub.f32 %v3785_v26, %v349_v21  ;;  %v327_v0 = vand.u32 4294901760, %v326_v15  ;;  %v356_v23 = vsub.f32 %v3787_v27, %v355_v54  ;;  %v367_v62 = vand.u32 4294901760, %v3791_v36 }
  0x74   :  { %3002 = vmatpush1.bf16.msra.mxu1 %v3001_v32  ;;  %3098 = vmatpush1.bf16.msra.mxu0 %v3097_v51  ;;  %v361_v34 = vand.u32 4294901760, %v3793_v37  ;;  %v333_v50 = vand.u32 4294901760, %v332_v58  ;;  %v345_v22 = vand.u32 4294901760, %v344_v10  ;;  %v373_v19 = vand.u32 4294901760, %v3799_v46 }
  0x75   :  { %3004 = vmatprep.subr.bf16.mxu1 %v3003_v3  ;;  %3100 = vmatprep.subr.bf16.mxu0 %v3099_v45  ;;  %v379_v42 = vand.u32 4294901760, %v3805_v53  ;;  %v3105_v47 = vpack.c.bf16 %v325_v43, %v313_v57  ;;  %v3107_v35 = vpack.c.bf16 %v343_v30, %v331_v52  ;;  %v339_v56 = vand.u32 4294901760, %v338_v18 }
  0x76   :  { %v368_v51 = vsub.f32 %v3791_v36, %v367_v62  ;;  %v351_v59 = vand.u32 4294901760, %v350_v5  ;;  %v362_v32 = vsub.f32 %v3793_v37, %v361_v34  ;;  %v374_v15 = vsub.f32 %v3799_v46, %v373_v19 }
  0x77   :  { %v380_v27 = vsub.f32 %v3805_v53, %v379_v42  ;;  %v3009_v45 = vpack.c.bf16 %v327_v0, %v315_v55  ;;  %v357_v3 = vand.u32 4294901760, %v356_v23  ;;  %v391_v58 = vand.u32 4294901760, %v3811_v2 }
  0x78   :  { %3006 = vmatpush1.bf16.msra.mxu1 %v3005_v38  ;;  %3102 = vmatpush1.bf16.msra.mxu0 %v3101_v60  ;;  %v385_v10 = vand.u32 4294901760, %v3815_v13  ;;  %v3011_v52 = vpack.c.bf16 %v345_v22, %v333_v50  ;;  %v369_v30 = vand.u32 4294901760, %v368_v51  ;;  %v397_v57 = vand.u32 4294901760, %v3817_v14 }
  0x79   :  { %3008 = vmatprep.subr.bf16.mxu1 %v3007_v6  ;;  %3104 = vmatprep.subr.bf16.mxu0 %v3103_v17  ;;  %v403_v43 = vand.u32 4294901760, %v3821_v4  ;;  %v3109_v18 = vpack.c.bf16 %v349_v21, %v337_v39  ;;  %v3111_v5 = vpack.c.bf16 %v367_v62, %v355_v54  ;;  %v392_v53 = vsub.f32 %v3811_v2, %v391_v58 }
  0x7a   :  { %v3013_v38 = vpack.c.bf16 %v351_v59, %v339_v56  ;;  %v363_v60 = vand.u32 4294901760, %v362_v32  ;;  %v375_v55 = vand.u32 4294901760, %v374_v15  ;;  %v381_v0 = vand.u32 4294901760, %v380_v27 }
  0x7b   :  { %v386_v23 = vsub.f32 %v3815_v13, %v385_v10  ;;  %v398_v6 = vsub.f32 %v3817_v14, %v397_v57  ;;  %v415_v17 = vand.u32 4294901760, %v3835_v28  ;;  %v409_v50 = vand.u32 4294901760, %v3841_v11 }
  0x7c   :  { %3010 = vmatpush1.bf16.msra.mxu1 %v3009_v45  ;;  %3106 = vmatpush1.bf16.msra.mxu0 %v3105_v47  ;;  %v3015_v39 = vpack.c.bf16 %v369_v30, %v357_v3  ;;  %v393_v21 = vand.u32 4294901760, %v392_v53  ;;  %v404_v54 = vsub.f32 %v3821_v4, %v403_v43  ;;  %v421_v62 = vand.u32 4294901760, %v3848_v31 }
  0x7d   :  { %3012 = vmatprep.subr.bf16.mxu1 %v3011_v52  ;;  %3108 = vmatprep.subr.bf16.mxu0 %v3107_v35  ;;  %v416_v27 = vsub.f32 %v3835_v28, %v415_v17  ;;  %v3017_v22 = vpack.c.bf16 %v375_v55, %v363_v60  ;;  %v3113_v47 = vpack.c.bf16 %v373_v19, %v361_v34  ;;  %v387_v56 = vand.u32 4294901760, %v386_v23  ;;  %v4625_v55 = vld [vmem:[#allocation19_spill] sm:$0xff]  ;;  %v4626_v23 = vld [vmem:[#allocation21_spill] sm:$0xff] }
  0x7e   :  { %v399_v51 = vand.u32 4294901760, %v398_v6  ;;  %v410_v59 = vsub.f32 %v3841_v11, %v409_v50  ;;  %v422_v32 = vsub.f32 %v3848_v31, %v421_v62  ;;  %v3019_v35 = vpack.c.bf16 %v393_v21, %v381_v0 }
  0x7f   :  { %v3115_v53 = vpack.c.bf16 %v391_v58, %v379_v42  ;;  %v405_v15 = vand.u32 4294901760, %v404_v54  ;;  %v417_v45 = vand.u32 4294901760, %v416_v27  ;;  %v3117_v52 = vpack.c.bf16 %v397_v57, %v385_v10  ;;  %v4618_v57 = vld [vmem:[#allocation15_spill] sm:$0xff] }
  0x80   :  { %3014 = vmatpush1.bf16.msra.mxu1 %v3013_v38  ;;  %3110 = vmatpush1.bf16.msra.mxu0 %v3109_v18  ;;  %v3021_v3 = vpack.c.bf16 %v399_v51, %v387_v56  ;;  %v411_v30 = vand.u32 4294901760, %v410_v59  ;;  %v423_v34 = vand.u32 4294901760, %v422_v32  ;;  %v3119_v18 = vpack.c.bf16 %v415_v17, %v403_v43  ;;  %v4619_v43 = vld [vmem:[#allocation18_spill] sm:$0xff]  ;;  %v4628_v17 = vld [vmem:[#allocation25_spill] sm:$0xff]  ;;  %v4639_v27 = vld [vmem:[#allocation35_spill] sm:$0xff] }
  0x81   :  { %3016 = vmatprep.subr.bf16.mxu1 %v3015_v39  ;;  %3112 = vmatprep.subr.bf16.mxu0 %v3111_v5  ;;  %v3023_v19 = vpack.c.bf16 %v417_v45, %v405_v15  ;;  %v3121_v60 = vpack.c.bf16 %v421_v62, %v409_v50  ;;  %v3027_v42 = vpack.c.bf16 %v3722_v25, %v3715_v20  ;;  %v4620_v20 = vld [vmem:[#allocation20_spill] sm:$0xff]  ;;  %v990_v59 = vld [vmem:[#allocation7 + $0x20] sm:$0xff]  ;;  %v991_v32 = vld [vmem:[#allocation7 + $0x28] sm:$0xff] }
  0x82   :  { %v3025_v38 = vpack.c.bf16 %v423_v34, %v411_v30  ;;  %v3029_v58 = vpack.c.bf16 %v3729_v33, %v3726_v29  ;;  %v3031_v10 = vpack.c.bf16 %v3737_v41, %v3735_v40  ;;  %v3033_v25 = vpack.c.bf16 %v4620_v20, %v4619_v43  ;;  %v4621_v5 = vld [vmem:[#allocation16_spill] sm:$0xff]  ;;  %v4623_v33 = vld [vmem:[#allocation22_spill] sm:$0xff] }
  0x83   :  { %v3035_v29 = vpack.c.bf16 %v3747_v49, %v3745_v48  ;;  %v4624_v40 = vld [vmem:[#allocation24_spill] sm:$0xff]  ;;  %v3039_v0 = vpack.c.bf16 %v3763_v1, %v3761_v63  ;;  %v3041_v48 = vpack.c.bf16 %v3769_v8, %v3767_v7  ;;  %v4627_v49 = vld [vmem:[#allocation23_spill] sm:$0xff]  ;;  %v3043_v6 = vpack.c.bf16 %v3777_v12, %v3771_v9  ;;  %v4629_v63 = vld [vmem:[#allocation26_spill] sm:$0xff] }
  0x84   :  { %3018 = vmatpush1.bf16.msra.mxu1 %v3017_v22  ;;  %3114 = vmatpush1.bf16.msra.mxu0 %v3113_v47  ;;  %v3037_v41 = vpack.c.bf16 %v4624_v40, %v4623_v33  ;;  %v3045_v50 = vpack.c.bf16 %v3785_v26, %v3783_v24  ;;  %v4630_v1 = vld [vmem:[#allocation28_spill] sm:$0xff]  ;;  %v4631_v7 = vld [vmem:[#allocation27_spill] sm:$0xff]  ;;  %v3049_v8 = vpack.c.bf16 %v3799_v46, %v3793_v37  ;;  %v4632_v9 = vld [vmem:[#allocation29_spill] sm:$0xff]  ;;  %v3620_v47 = vmov 0.0|0.0  }
  0x85   :  { %3020 = vmatprep.subr.bf16.mxu1 %v3019_v35  ;;  %3116 = vmatprep.subr.bf16.mxu0 %v3115_v53  ;;  %v3047_v39 = vpack.c.bf16 %v3791_v36, %v4630_v1  ;;  %v4633_v12 = vld [vmem:[#allocation32_spill] sm:$0xff]  ;;  %v4634_v24 = vld [vmem:[#allocation30_spill] sm:$0xff]  ;;  %v3053_v26 = vpack.c.bf16 %v3817_v14, %v3815_v13  ;;  %v4635_v36 = vld [vmem:[#allocation31_spill] sm:$0xff]  ;;  %v3055_v54 = vpack.c.bf16 %v3835_v28, %v3821_v4  ;;  %v1022_v35 = vand.u32 4294901760, %v990_v59 }
  0x86   :  { %v3051_v21 = vpack.c.bf16 %v3811_v2, %v4633_v12  ;;  %v4636_v37 = vld [vmem:[#allocation33_spill] sm:$0xff]  ;;  %v3057_v46 = vpack.c.bf16 %v3848_v31, %v3841_v11  ;;  %v4637_v2 = vld [vmem:[#allocation34_spill] sm:$0xff]  ;;  %v4638_v62 = vld [vmem:[#allocation36_spill] sm:$0xff]  ;;  %v1025_v53 = vand.u32 4294901760, %v991_v32 }
  0x87   :  { %v986_v13 = vld [vmem:[#allocation7] sm:$0xff]  ;;  %v987_v14 = vld [vmem:[#allocation7 + $0x8] sm:$0xff]  ;;  %v988_v11 = vld [vmem:[#allocation7 + $0x10] sm:$0xff] }
  0x88   :  { %3022 = vmatpush1.bf16.msra.mxu1 %v3021_v3  ;;  %3118 = vmatpush1.bf16.msra.mxu0 %v3117_v52  ;;  %v1010_v22 = vand.u32 4294901760, %v986_v13  ;;  %v1013_v4 = vand.u32 4294901760, %v987_v14  ;;  %v989_v31 = vld [vmem:[#allocation7 + $0x18] sm:$0xff]  ;;  %v1016_v56 = vand.u32 4294901760, %v988_v11  ;;  %v3978_v15 = vpack.c.bf16 %v1025_v53, %v1022_v35  ;;  %v992_v45 = vld [vmem:[#allocation7 + $0x30] sm:$0xff] }
  0x89   :  { %3024 = vmatprep.subr.bf16.mxu1 %v3023_v19  ;;  %3120 = vmatprep.subr.bf16.mxu0 %v3119_v18  ;;  %v1019_v51 = vand.u32 4294901760, %v989_v31  ;;  %v993_v3 = vld [vmem:[#allocation7 + $0x38] sm:$0xff]  ;;  %v1028_v52 = vand.u32 4294901760, %v992_v45  ;;  %v994_v19 = vld [vmem:[#allocation7 + $0x40] sm:$0xff]  ;;  %v995_v18 = vld [vmem:[#allocation7 + $0x48] sm:$0xff] }
  0x8a   :  { %v3968_v28 = vpack.c.bf16 %v1013_v4, %v1010_v22  ;;  %v1031_v30 = vand.u32 4294901760, %v993_v3  ;;  %v3994_v33 = vsub.f32 %v986_v13, %v1010_v22  ;;  %v3996_v40 = vsub.f32 %v987_v14, %v1013_v4 }
  0x8c   :  { %3026 = vmatpush1.bf16.msra.mxu1 %v3025_v38  ;;  %3122 = vmatpush1.bf16.msra.mxu0 %v3121_v60  ;;  %v3982_v34 = vpack.c.bf16 %v1031_v30, %v1028_v52  ;;  %v1034_v38 = vand.u32 4294901760, %v994_v19  ;;  %v1037_v60 = vand.u32 4294901760, %v995_v18 }
  0x8d   :  { %3028 = vmatprep.subr.bf16.mxu1 %v3027_v42  ;;  %3124 = vmatprep.subr.bf16.mxu0 %v3713_v16  ;;  %v4622_v16 = vld [vmem:[#allocation17_spill] sm:$0xff] }
  0x8e   :  { %v3986_v42 = vpack.c.bf16 %v1037_v60, %v1034_v38  ;;  %v4015_v1 = vsub.f32 %v995_v18, %v1037_v60 }
  0x8f   :  { %459 = vmatmul.mubr.f32.vlgmr.msra.gmra.mrb[0].mxu1 %v3809_v61  ;;  %870 = vmatmul.mubr.f32.vlgmr.msra.gmra.mrb[0].mxu0 %v3809_v61 }
  0x90   :  { %3030 = vmatpush1.bf16.msra.mxu1 %v3029_v58  ;;  %3126 = vmatpush1.bf16.msra.mxu0 %v4618_v57  ;;  %v996_v58 = vld [vmem:[#allocation7 + $0x50] sm:$0xff] }
  0x91   :  { %3032 = vmatprep.subr.bf16.mxu1 %v3031_v10  ;;  %3128 = vmatprep.subr.bf16.mxu0 %v4621_v5  ;;  %v997_v10 = vld [vmem:[#allocation7 + $0x58] sm:$0xff]  ;;  %v1040_v57 = vand.u32 4294901760, %v996_v58  ;;  %v999_v5 = vld [vmem:[#allocation7 + $0x68] sm:$0xff] }
  0x92   :  { %593 = vmatprep.mubr.f32.mxu1 %v4617_v44  ;;  %972 = vmatprep.mubr.f32.mxu0 %v4617_v44  ;;  %v1043_v43 = vand.u32 4294901760, %v997_v10 }
  0x94   :  { %3034 = vmatpush1.bf16.msra.mxu1 %v3033_v25  ;;  %3130 = vmatpush1.bf16.msra.mxu0 %v4622_v16  ;;  %v3990_v20 = vpack.c.bf16 %v1043_v43, %v1040_v57  ;;  %v998_v25 = vld [vmem:[#allocation7 + $0x60] sm:$0xff]  ;;  %v1049_v16 = vand.u32 4294901760, %v999_v5 }
  0x95   :  { %3036 = vmatprep.subr.bf16.mxu1 %v3035_v29  ;;  %3132 = vmatprep.subr.bf16.mxu0 %v4625_v55  ;;  %v1046_v29 = vand.u32 4294901760, %v998_v25  ;;  %v4000_v55 = vsub.f32 %v988_v11, %v1016_v56 }
  0x98   :  { %3038 = vmatpush1.bf16.msra.mxu1 %v3037_v41  ;;  %3134 = vmatpush1.bf16.msra.mxu0 %v4626_v23  ;;  %v3998_v41 = vpack.c.bf16 %v1049_v16, %v1046_v29  ;;  %v4004_v23 = vsub.f32 %v990_v59, %v1022_v35 }
  0x99   :  { %3040 = vmatprep.subr.bf16.mxu1 %v3039_v0  ;;  %3136 = vmatprep.subr.bf16.mxu0 %v4627_v49  ;;  %v4002_v0 = vsub.f32 %v989_v31, %v1019_v51  ;;  %v1000_v49 = vld [vmem:[#allocation7 + $0x70] sm:$0xff] }
  0x9a   :  { %v1052_v12 = vand.u32 4294901760, %v1000_v49  ;;  %v4583_v11 = vand.u32 4294901760, %v4004_v23 }
  0x9c   :  { %3042 = vmatpush1.bf16.msra.mxu1 %v3041_v48  ;;  %3138 = vmatpush1.bf16.msra.mxu0 %v4628_v17  ;;  %v4006_v48 = vsub.f32 %v991_v32, %v1025_v53  ;;  %v4009_v17 = vsub.f32 %v992_v45, %v1028_v52  ;;  %v1132_v32 = vsub.f32 %v4004_v23, %v4583_v11 }
  0x9d   :  { %3044 = vmatprep.subr.bf16.mxu1 %v3043_v6  ;;  %3140 = vmatprep.subr.bf16.mxu0 %v4629_v63  ;;  %v1001_v6 = vld [vmem:[#allocation7 + $0x78] sm:$0xff]  ;;  %v4013_v63 = vsub.f32 %v994_v19, %v1034_v38 }
  0x9e   :  { %v4582_v31 = vand.u32 4294901760, %v4006_v48  ;;  %v1133_v45 = vand.u32 4294901760, %v1132_v32  ;;  %v4581_v52 = vand.u32 4294901760, %v4009_v17 }
  0xa0   :  { %3046 = vmatpush1.bf16.msra.mxu1 %v3045_v50  ;;  %3142 = vmatpush1.bf16.msra.mxu0 %v4631_v7  ;;  %v4011_v50 = vsub.f32 %v993_v3, %v1031_v30  ;;  %v4020_v7 = vsub.f32 %v997_v10, %v1043_v43  ;;  %v1139_v35 = vsub.f32 %v4006_v48, %v4582_v31  ;;  %v4579_v10 = vand.u32 4294901760, %v4013_v63 }
  0xa1   :  { %3048 = vmatprep.subr.bf16.mxu1 %v3047_v39  ;;  %3144 = vmatprep.subr.bf16.mxu0 %v4632_v9  ;;  %v4018_v39 = vsub.f32 %v996_v58, %v1040_v57  ;;  %v4024_v9 = vsub.f32 %v999_v5, %v1049_v16  ;;  %v1146_v18 = vsub.f32 %v4009_v17, %v4581_v52  ;;  %v4578_v57 = vand.u32 4294901760, %v4015_v1 }
  0xa2   :  { %v1140_v3 = vand.u32 4294901760, %v1139_v35  ;;  %v4580_v30 = vand.u32 4294901760, %v4011_v50 }
  0xa3   :  { %v1147_v60 = vand.u32 4294901760, %v1146_v18  ;;  %v1167_v5 = vsub.f32 %v4015_v1, %v4578_v57 }
  0xa4   :  { %3050 = vmatpush1.bf16.msra.mxu1 %v3049_v8  ;;  %3146 = vmatpush1.bf16.msra.mxu0 %v4634_v24  ;;  %v4022_v8 = vsub.f32 %v998_v25, %v1046_v29  ;;  %v1103_v24 = vand.u32 4294901760, %v3994_v33  ;;  %v4068_v19 = vpack.c.bf16 %v1140_v3, %v1133_v45  ;;  %v1153_v38 = vsub.f32 %v4011_v50, %v4580_v30 }
  0xa5   :  { %3052 = vmatprep.subr.bf16.mxu1 %v3051_v21  ;;  %3148 = vmatprep.subr.bf16.mxu0 %v4635_v36  ;;  %v1055_v21 = vand.u32 4294901760, %v1001_v6  ;;  %v1160_v25 = vsub.f32 %v4013_v63, %v4579_v10  ;;  %v1168_v16 = vand.u32 4294901760, %v1167_v5 }
  0xa6   :  { %v1154_v58 = vand.u32 4294901760, %v1153_v38 }
  0xa7   :  { %v4032_v36 = vpack.c.bf16 %v1055_v21, %v1052_v12  ;;  %v1161_v29 = vand.u32 4294901760, %v1160_v25 }
  0xa8   :  { %3054 = vmatpush1.bf16.msra.mxu1 %v3053_v26  ;;  %3150 = vmatpush1.bf16.msra.mxu0 %v4636_v37  ;;  %v4586_v26 = vand.u32 4294901760, %v3996_v40  ;;  %v4036_v37 = vsub.f32 %v1001_v6, %v1055_v21  ;;  %v4078_v43 = vpack.c.bf16 %v1154_v58, %v1147_v60  ;;  %v4576_v6 = vand.u32 4294901760, %v4020_v7 }
  0xa9   :  { %3056 = vmatprep.subr.bf16.mxu1 %v3055_v54  ;;  %3152 = vmatprep.subr.bf16.mxu0 %v4637_v2  ;;  %v4034_v54 = vsub.f32 %v1000_v49, %v1052_v12  ;;  %v4577_v49 = vand.u32 4294901760, %v4018_v39  ;;  %v4088_v12 = vpack.c.bf16 %v1168_v16, %v1161_v29  ;;  %v3204_v29 = vpack.c.bf16 %v3996_v40, %v3994_v33 }
  0xaa   :  { %v1111_v2 = vsub.f32 %v3996_v40, %v4586_v26  ;;  %v4572_v3 = vand.u32 4294901760, %v4036_v37  ;;  %v3207_v16 = vpack.c.bf16 %v4002_v0, %v4000_v55 }
  0xab   :  { %v1174_v21 = vsub.f32 %v4018_v39, %v4577_v49  ;;  %v4573_v45 = vand.u32 4294901760, %v4034_v54 }
  0xac   :  { %3058 = vmatpush1.bf16.msra.mxu1 %v3057_v46  ;;  %3154 = vmatpush1.bf16.msra.mxu0 %v4638_v62  ;;  %v1104_v46 = vsub.f32 %v3994_v33, %v1103_v24  ;;  %v4585_v62 = vand.u32 4294901760, %v4000_v55  ;;  %v1112_v14 = vand.u32 4294901760, %v1111_v2  ;;  %v1209_v60 = vsub.f32 %v4036_v37, %v4572_v3 }
  0xad   :  { %3155 = vmatprep.subr.bf16.mxu1 %v3620_v47  ;;  %3299 = vmatprep.subr.bf16.mxu0 %v3620_v47  ;;  %v1175_v2 = vand.u32 4294901760, %v1174_v21  ;;  %v1202_v38 = vsub.f32 %v4034_v54, %v4573_v45  ;;  %v3210_v21 = vpack.c.bf16 %v4006_v48, %v4004_v23  ;;  %v4643_v33 = vand.u32 4294901760, %v4004_v23 }
  0xae   :  { %v1105_v13 = vand.u32 4294901760, %v1104_v46  ;;  %v1118_v22 = vsub.f32 %v4000_v55, %v4585_v62  ;;  %v1181_v46 = vsub.f32 %v4020_v7, %v4576_v6  ;;  %v1210_v25 = vand.u32 4294901760, %v1209_v60  ;;  %v113_v60 = vld [vmem:[%s4542_s2] sm:$0x3] }
  0xaf   :  { %596 = vmatmul.mubr.f32.vlgmr.msra.gmra.mrb[0].mxu1 %v4639_v27  ;;  %974 = vmatmul.mubr.f32.vlgmr.msra.gmra.mrb[0].mxu0 %v3809_v61  ;;  %v3974_v61 = vpack.c.bf16 %v1019_v51, %v1016_v56  ;;  %v4584_v27 = vand.u32 4294901760, %v4002_v0  ;;  %v1203_v58 = vand.u32 4294901760, %v1202_v38  ;;  %v4649_v23 = vand.u32 4294901760, %v4018_v39 }
  0xb0   :  { %3157 = vmatpush3.bf16.msra.mxu1 %v3968_v28  ;;  %2575 = vmatprep.mubr.msk.f32.mxu1 %vm3621_vm0, %v4617_v44  ;;  %v4056_v56 = vpack.c.bf16 %v1112_v14, %v1105_v13  ;;  %v1119_v51 = vand.u32 4294901760, %v1118_v22  ;;  %v1182_v13 = vand.u32 4294901760, %v1181_v46  ;;  %v4575_v14 = vand.u32 4294901760, %v4022_v8 }
  0xb1   :  { %3158 = vmatprep.subr.bf16.mxu1 %v3620_v47  ;;  %2785 = vmatprep.mubr.msk.f32.mxu0 %vm3621_vm0, %v4617_v44  ;;  %v1125_v4 = vsub.f32 %v4002_v0, %v4584_v27  ;;  %v4574_v22 = vand.u32 4294901760, %v4024_v9  ;;  %v3201_v5 = vpack.c.bf16 %v1210_v25, %v1203_v58  ;;  %v3213_v46 = vpack.c.bf16 %v4011_v50, %v4009_v17 }
  0xb3   :  { %v1126_v59 = vand.u32 4294901760, %v1125_v4  ;;  %v3195_v4 = vpack.c.bf16 %v1182_v13, %v1175_v2  ;;  %v3216_v2 = vpack.c.bf16 %v4015_v1, %v4013_v63  ;;  %v3219_v13 = vpack.c.bf16 %v4020_v7, %v4018_v39 }
  0xb4   :  { %3160 = vmatpush3.bf16.msra.mxu1 %v3974_v61 }
  0xb5   :  { %3161 = vmatprep.subr.bf16.mxu1 %v3620_v47  ;;  %v4064_v53 = vpack.c.bf16 %v1126_v59, %v1119_v51  ;;  %v1188_v51 = vsub.f32 %v4022_v8, %v4575_v14  ;;  %v1195_v59 = vsub.f32 %v4024_v9, %v4574_v22 }
  0xb7   :  { %v1189_v32 = vand.u32 4294901760, %v1188_v51  ;;  %v1196_v35 = vand.u32 4294901760, %v1195_v59  ;;  %v3222_v51 = vpack.c.bf16 %v4024_v9, %v4022_v8  ;;  %v3225_v59 = vpack.c.bf16 %v4036_v37, %v4034_v54 }
  0xb8   :  { %3163 = vmatpush3.bf16.msra.mxu1 %v3978_v15 }
  0xb9   :  { %3164 = vmatprep.subr.bf16.mxu1 %v3620_v47  ;;  %v3198_v18 = vpack.c.bf16 %v1196_v35, %v1189_v32  ;;  %v115_v32 = vlaneseq }
  0xbb   :  { %v116_v35 = vshrl.u32 %v115_v32, 7 }
  0xbc   :  { %3166 = vmatpush3.bf16.msra.mxu1 %v3982_v34 }
  0xbd   :  { %3167 = vmatprep.subr.bf16.mxu1 %v3620_v47  ;;  %v117_v38 = vsub.s32 0, %v116_v35  ;;  %v121_v58 = vsub.s32 1, %v116_v35 }
  0xbf   :  { %v118_v25 = vrot.slane %v113_v60, %v117_v38  ;;  %v122_v3 = vrot.slane %v113_v60, %v121_v58  ;;  %v1667_v58 = vld [vmem:[#allocation8 + $0x60] sm:$0xff] }
  0xc0   :  { %3169 = vmatpush3.bf16.msra.mxu1 %v3986_v42 }
  0xc1   :  { %3170 = vmatprep.subr.bf16.mxu1 %v3620_v47 }
  0xc4   :  { %3172 = vmatpush3.bf16.msra.mxu1 %v3990_v20 }
  0xc5   :  { %3173 = vmatprep.subr.bf16.mxu1 %v3620_v47 }
  0xc8   :  { %3175 = vmatpush3.bf16.msra.mxu1 %v3998_v41 }
  0xc9   :  { %3176 = vmatprep.subr.bf16.mxu1 %v3620_v47 }
  0xcc   :  { %3178 = vmatpush3.bf16.msra.mxu1 %v4032_v36 }
  0xcd   :  { %3179 = vmatprep.subr.bf16.mxu1 %v3620_v47 }
 0x182   :  { %v597_v45 = vpop.f32.mrb[0].mxu1  ;;  %v975_v22 = vpop.f32.mrb[0].mxu0 }
 0x183   :  { %v3443_v14 = vadd.f32 %v597_v45, %v118_v25  ;;  %v599_v6 = vpop.f32.mrb[1].mxu1  ;;  %v977_v49 = vpop.f32.mrb[1].mxu0  ;;  %v1668_v25 = vld [vmem:[#allocation8 + $0x68] sm:$0xff] }
 0x184   :  { %v3445_v57 = vadd.f32 %v599_v6, %v122_v3 }
 0x185   :  { %v3444_v10 = vadd.f32 %v3443_v14, %v975_v22  ;;  %v4648_v22 = vand.u32 4294901760, %v4015_v1  ;;  %v4654_v1 = vand.u32 4294901760, %v4036_v37 }
 0x186   :  { %v3446_v30 = vadd.f32 %v3445_v57, %v977_v49  ;;  %v4642_v57 = vand.u32 4294901760, %v4002_v0  ;;  %v4645_v49 = vand.u32 4294901760, %v4009_v17  ;;  %v4651_v17 = vand.u32 4294901760, %v4022_v8 }
 0x188   :  { %v981_v52 = vmul.f32 0.70710677, %v3446_v30  ;;  %v980_v32 = vmul.f32 0.5, %v3446_v30  ;;  %v4640_v30 = vand.u32 4294901760, %v3996_v40  ;;  %v4644_v40 = vand.u32 4294901760, %v4006_v48 }
 0x189   :  { %v4650_v48 = vand.u32 4294901760, %v4020_v7  ;;  %v1660_v7 = vld [vmem:[#allocation8 + $0x28] sm:$0xff] }
 0x18a   :  { %3489 = verf.f32 %v981_v52  ;;  %v1694_v8 = vand.u32 4294901760, %v1660_v7 }
 0x18b   :  { %v3267_v45 = vpack.c.bf16 %v4650_v48, %v4649_v23 }
 0x194   :  { %v3490_v31 = vpop.eup %3489 }
 0x195   :  { %v983_v11 = vadd.f32 1.0, %v3490_v31 }
 0x197   :  { %v984_v27 = vmul.f32 %v983_v11, %v980_v32  ;;  %v1715_v32 = vand.u32 4294901760, %v1667_v58 }
 0x199   :  { %v985_v62 = vmul.f32 %v3444_v10, %v984_v27  ;;  %v1656_v27 = vld [vmem:[#allocation8 + $0x8] sm:$0xff]  ;;  %v4641_v10 = vand.u32 4294901760, %v4000_v55  ;;  %v4646_v55 = vand.u32 4294901760, %v4011_v50  ;;  %v4652_v50 = vand.u32 4294901760, %v4024_v9  ;;  %v1661_v9 = vld [vmem:[#allocation8 + $0x30] sm:$0xff] }
 0x19a   :  { %v1682_v31 = vand.u32 4294901760, %v1656_v27 }
 0x19b   :  { %v4131_v26 = vand.u32 4294901760, %v985_v62  ;;  %v3261_v0 = vpack.c.bf16 %v4646_v55, %v4645_v49  ;;  %v3270_v3 = vpack.c.bf16 %v4652_v50, %v4651_v17 }
 0x19c   :  { %v4163_v52 = vsub.f32 %v1656_v27, %v1682_v31  ;;  %v4305_v27 = vsub.f32 %v1660_v7, %v1694_v8 }
 0x19d   :  { %v4134_v35 = vsub.f32 %v985_v62, %v4131_v26  ;;  %v1655_v62 = vld [vmem:[#allocation8] sm:$0xff] }
 0x19e   :  { %v1679_v11 = vand.u32 4294901760, %v1655_v62 }
 0x19f   :  { %v1092_v38 = vand.u32 4294901760, %v4134_v35 }
 0x1a1   :  { %v1093_v6 = vsub.f32 %v4134_v35, %v1092_v38 }
 0x1a3   :  { %v1094_v14 = vand.u32 4294901760, %v1093_v6 }
 0x1a5   :  { %2576 = vmatmul.mubr.f32.vlgmr.msra.gmra.mrb[2].mxu1 %v1094_v14 }
 0x1a6   :  { %3181 = vmatpush3.bf16.msra.mxu1 %v4056_v56  ;;  %2610 = vmatprep.mubr.msk.f32.mxu1 %vm3621_vm0, %v4617_v44  ;;  %v4159_v56 = vpack.c.bf16 %v1682_v31, %v1679_v11  ;;  %v1670_v31 = vld [vmem:[#allocation8 + $0x78] sm:$0xff] }
 0x1a7   :  { %3182 = vmatprep.subr.bf16.mxu1 %v3620_v47  ;;  %v1724_v55 = vand.u32 4294901760, %v1670_v31 }
 0x1a8   :  { %3301 = vmatpush3.bf16.msra.mxu0 %v4159_v56 }
 0x1a9   :  { %3302 = vmatprep.subr.bf16.mxu0 %v3620_v47  ;;  %v4331_v23 = vsub.f32 %v1670_v31, %v1724_v55 }
 0x1aa   :  { %3184 = vmatpush3.bf16.msra.mxu1 %v4064_v53  ;;  %v4161_v53 = vsub.f32 %v1655_v62, %v1679_v11  ;;  %v1669_v11 = vld [vmem:[#allocation8 + $0x70] sm:$0xff] }
 0x1ab   :  { %3185 = vmatprep.subr.bf16.mxu1 %v3620_v47  ;;  %v1721_v49 = vand.u32 4294901760, %v1669_v11 }
 0x1ae   :  { %3187 = vmatpush3.bf16.msra.mxu1 %v4068_v19  ;;  %v3252_v19 = vpack.c.bf16 %v4640_v30, %v1103_v24  ;;  %v3258_v24 = vpack.c.bf16 %v4644_v40, %v4643_v33  ;;  %v4321_v40 = vsub.f32 %v1667_v58, %v1715_v32 }
 0x1af   :  { %3188 = vmatprep.subr.bf16.mxu1 %v3620_v47 }
 0x1b2   :  { %3190 = vmatpush3.bf16.msra.mxu1 %v4078_v43  ;;  %v3255_v43 = vpack.c.bf16 %v4642_v57, %v4641_v10 }
 0x1b3   :  { %3191 = vmatprep.subr.bf16.mxu1 %v3620_v47 }
 0x1b6   :  { %3193 = vmatpush3.bf16.msra.mxu1 %v4088_v12  ;;  %v4647_v12 = vand.u32 4294901760, %v4013_v63  ;;  %v4653_v63 = vand.u32 4294901760, %v4034_v54 }
 0x1b7   :  { %3194 = vmatprep.subr.bf16.mxu1 %v3620_v47 }
 0x1ba   :  { %3196 = vmatpush3.bf16.msra.mxu1 %v3195_v4  ;;  %v3264_v4 = vpack.c.bf16 %v4648_v22, %v4647_v12  ;;  %v1779_v12 = vand.u32 4294901760, %v4163_v52  ;;  %v4327_v22 = vpack.c.bf16 %v1724_v55, %v1721_v49 }
 0x1bb   :  { %3197 = vmatprep.subr.bf16.mxu1 %v3620_v47 }
 0x1be   :  { %3199 = vmatpush3.bf16.msra.mxu1 %v3198_v18  ;;  %v3273_v18 = vpack.c.bf16 %v4654_v1, %v4653_v63 }
 0x1bf   :  { %3200 = vmatprep.subr.bf16.mxu1 %v3620_v47 }
 0x1c2   :  { %3202 = vmatpush3.bf16.msra.mxu1 %v3201_v5  ;;  %v1663_v5 = vld [vmem:[#allocation8 + $0x40] sm:$0xff] }
 0x1c3   :  { %3203 = vmatprep.subr.bf16.mxu1 %v3620_v47 }
 0x1c5   :  { %2611 = vmatmul.mubr.f32.vlgmr.msra.gmra.mrb[2].mxu1 %v4131_v26 }
 0x1c6   :  { %3205 = vmatpush3.bf16.msra.mxu1 %v3204_v29  ;;  %2645 = vmatprep.mubr.msk.f32.mxu1 %vm3621_vm0, %v4617_v44  ;;  %v1664_v29 = vld [vmem:[#allocation8 + $0x48] sm:$0xff] }
 0x1c7   :  { %3206 = vmatprep.subr.bf16.mxu1 %v3620_v47 }
 0x1ca   :  { %3208 = vmatpush3.bf16.msra.mxu1 %v3207_v16  ;;  %v1703_v16 = vand.u32 4294901760, %v1663_v5 }
 0x1cb   :  { %3209 = vmatprep.subr.bf16.mxu1 %v3620_v47 }
 0x1cc   :  { %v4312_v10 = vsub.f32 %v1663_v5, %v1703_v16 }
 0x1ce   :  { %3211 = vmatpush3.bf16.msra.mxu1 %v3210_v21  ;;  %v1706_v21 = vand.u32 4294901760, %v1664_v29 }
 0x1cf   :  { %3212 = vmatprep.subr.bf16.mxu1 %v3620_v47 }
 0x1d0   :  { %v4314_v57 = vsub.f32 %v1664_v29, %v1706_v21 }
 0x1d2   :  { %3214 = vmatpush3.bf16.msra.mxu1 %v3213_v46  ;;  %v4289_v46 = vpack.c.bf16 %v1706_v21, %v1703_v16 }
 0x1d3   :  { %3215 = vmatprep.subr.bf16.mxu1 %v3620_v47 }
 0x1d6   :  { %3217 = vmatpush3.bf16.msra.mxu1 %v3216_v2  ;;  %v1665_v2 = vld [vmem:[#allocation8 + $0x50] sm:$0xff] }
 0x1d7   :  { %3218 = vmatprep.subr.bf16.mxu1 %v3620_v47 }
 0x1da   :  { %3220 = vmatpush3.bf16.msra.mxu1 %v3219_v13  ;;  %v1666_v13 = vld [vmem:[#allocation8 + $0x58] sm:$0xff] }
 0x1db   :  { %3221 = vmatprep.subr.bf16.mxu1 %v3620_v47 }
 0x1de   :  { %3223 = vmatpush3.bf16.msra.mxu1 %v3222_v51  ;;  %v1709_v51 = vand.u32 4294901760, %v1665_v2 }
 0x1df   :  { %3224 = vmatprep.subr.bf16.mxu1 %v3620_v47 }
 0x1e2   :  { %3226 = vmatpush3.bf16.msra.mxu1 %v3225_v59  ;;  %v1712_v59 = vand.u32 4294901760, %v1666_v13 }
 0x1e3   :  { %3227 = vmatprep.subr.bf16.mxu1 %v3620_v47 }
 0x1e4   :  { %v4293_v60 = vpack.c.bf16 %v1712_v59, %v1709_v51  ;;  %v4319_v33 = vsub.f32 %v1666_v13, %v1712_v59  ;;  %v4594_v13 = vand.u32 4294901760, %v4312_v10 }
 0x1e5   :  { %2646 = vmatmul.mubr.f32.vlgmr.msra.gmra.mrb[2].mxu1 %v4134_v35  ;;  %v1718_v35 = vand.u32 4294901760, %v1668_v25 }
 0x1e6   :  { %3229 = vmatpush3.bf16.msra.mxu1 %v3968_v28  ;;  %2680 = vmatprep.mubr.msk.f32.mxu1 %vm3621_vm0, %v4617_v44  ;;  %v1829_v58 = vsub.f32 %v4312_v10, %v4594_v13  ;;  %v4591_v31 = vand.u32 4294901760, %v4319_v33 }
 0x1e7   :  { %3230 = vmatprep.subr.bf16.mxu1 %v3620_v47 }
 0x1ea   :  { %3232 = vmatpush3.bf16.msra.mxu1 %v3974_v61 }
 0x1eb   :  { %3233 = vmatprep.subr.bf16.mxu1 %v3620_v47 }
 0x1ee   :  { %3235 = vmatpush3.bf16.msra.mxu1 %v3978_v15 }
 0x1ef   :  { %3236 = vmatprep.subr.bf16.mxu1 %v3620_v47 }
 0x1f2   :  { %3238 = vmatpush3.bf16.msra.mxu1 %v3982_v34 }
 0x1f3   :  { %3239 = vmatprep.subr.bf16.mxu1 %v3620_v47 }
 0x1f6   :  { %3241 = vmatpush3.bf16.msra.mxu1 %v3986_v42 }
 0x1f7   :  { %3242 = vmatprep.subr.bf16.mxu1 %v3620_v47 }
 0x1fa   :  { %3244 = vmatpush3.bf16.msra.mxu1 %v3990_v20 }
 0x1fb   :  { %3245 = vmatprep.subr.bf16.mxu1 %v3620_v47 }
 0x1fe   :  { %3247 = vmatpush3.bf16.msra.mxu1 %v3998_v41 }
 0x1ff   :  { %3248 = vmatprep.subr.bf16.mxu1 %v3620_v47 }
 0x202   :  { %3250 = vmatpush3.bf16.msra.mxu1 %v4032_v36 }
 0x203   :  { %3251 = vmatprep.subr.bf16.mxu1 %v3620_v47 }
 0x205   :  { %2681 = vmatmul.mubr.f32.vlgmr.msra.gmra.mrb[2].mxu1 %v1092_v38  ;;  %v4297_v38 = vpack.c.bf16 %v1718_v35, %v1715_v32  ;;  %v1830_v32 = vand.u32 4294901760, %v1829_v58 }
 0x206   :  { %3253 = vmatpush3.bf16.msra.mxu1 %v3252_v19  ;;  %2715 = vmatprep.mubr.msk.f32.mxu1 %vm3621_vm0, %v4617_v44 }
 0x207   :  { %3254 = vmatprep.subr.bf16.mxu1 %v3620_v47 }
 0x20a   :  { %3256 = vmatpush3.bf16.msra.mxu1 %v3255_v43  ;;  %v4317_v43 = vsub.f32 %v1665_v2, %v1709_v51  ;;  %v4593_v51 = vand.u32 4294901760, %v4314_v57 }
 0x20b   :  { %3257 = vmatprep.subr.bf16.mxu1 %v3620_v47 }
 0x20e   :  { %3259 = vmatpush3.bf16.msra.mxu1 %v3258_v24  ;;  %v4323_v24 = vsub.f32 %v1668_v25, %v1718_v35  ;;  %v1836_v25 = vsub.f32 %v4314_v57, %v4593_v51 }
 0x20f   :  { %3260 = vmatprep.subr.bf16.mxu1 %v3620_v47 }
 0x210   :  { %v1837_v35 = vand.u32 4294901760, %v1836_v25 }
 0x212   :  { %3262 = vmatpush3.bf16.msra.mxu1 %v3261_v0  ;;  %v1772_v0 = vand.u32 4294901760, %v4161_v53 }
 0x213   :  { %3263 = vmatprep.subr.bf16.mxu1 %v3620_v47 }
 0x214   :  { %v1773_v48 = vsub.f32 %v4161_v53, %v1772_v0 }
 0x216   :  { %3265 = vmatpush3.bf16.msra.mxu1 %v3264_v4  ;;  %v4329_v4 = vsub.f32 %v1669_v11, %v1721_v49  ;;  %v4592_v11 = vand.u32 4294901760, %v4317_v43  ;;  %v3336_v49 = vpack.c.bf16 %v1837_v35, %v1830_v32  ;;  %v3348_v32 = vpack.c.bf16 %v4163_v52, %v4161_v53 }
 0x217   :  { %3266 = vmatprep.subr.bf16.mxu1 %v3620_v47 }
 0x218   :  { %v1843_v55 = vsub.f32 %v4317_v43, %v4592_v11 }
 0x21a   :  { %3268 = vmatpush3.bf16.msra.mxu1 %v3267_v45  ;;  %v1780_v45 = vsub.f32 %v4163_v52, %v1779_v12 }
 0x21b   :  { %3269 = vmatprep.subr.bf16.mxu1 %v3620_v47 }
 0x21c   :  { %v1781_v63 = vand.u32 4294901760, %v1780_v45  ;;  %v1844_v45 = vand.u32 4294901760, %v1843_v55 }
 0x21e   :  { %3271 = vmatpush3.bf16.msra.mxu1 %v3270_v3  ;;  %v1774_v3 = vand.u32 4294901760, %v1773_v48  ;;  %v1850_v48 = vsub.f32 %v4319_v33, %v4591_v31 }
 0x21f   :  { %3272 = vmatprep.subr.bf16.mxu1 %v3620_v47 }
 0x222   :  { %3274 = vmatpush3.bf16.msra.mxu1 %v3273_v18 }
 0x223   :  { %3275 = vmatprep.subr.bf16.mxu1 %v3620_v47 }
 0x225   :  { %2716 = vmatmul.mubr.f32.vlgmr.msra.gmra.mrb[2].mxu1 %v4131_v26 }
 0x226   :  { %3277 = vmatpush3.bf16.msra.mxu1 %v3968_v28  ;;  %2750 = vmatprep.mubr.msk.f32.mxu1 %vm3621_vm0, %v4617_v44  ;;  %v1657_v28 = vld [vmem:[#allocation8 + $0x10] sm:$0xff] }
 0x227   :  { %3278 = vmatprep.subr.bf16.mxu1 %v3620_v47 }
 0x22a   :  { %3280 = vmatpush3.bf16.msra.mxu1 %v3974_v61  ;;  %v1658_v61 = vld [vmem:[#allocation8 + $0x18] sm:$0xff] }
 0x22b   :  { %3281 = vmatprep.subr.bf16.mxu1 %v3620_v47 }
 0x22e   :  { %3283 = vmatpush3.bf16.msra.mxu1 %v3978_v15  ;;  %v1685_v15 = vand.u32 4294901760, %v1657_v28 }
 0x22f   :  { %3284 = vmatprep.subr.bf16.mxu1 %v3620_v47 }
 0x230   :  { %v4299_v6 = vsub.f32 %v1657_v28, %v1685_v15 }
 0x232   :  { %3286 = vmatpush3.bf16.msra.mxu1 %v3982_v34  ;;  %v1688_v34 = vand.u32 4294901760, %v1658_v61  ;;  %v1786_v17 = vand.u32 4294901760, %v4299_v6 }
 0x233   :  { %3287 = vmatprep.subr.bf16.mxu1 %v3620_v47 }
 0x234   :  { %v4277_v39 = vpack.c.bf16 %v1688_v34, %v1685_v15  ;;  %v4301_v14 = vsub.f32 %v1658_v61, %v1688_v34  ;;  %v1787_v1 = vsub.f32 %v4299_v6, %v1786_v17  ;;  %v1807_v61 = vand.u32 4294901760, %v4305_v27 }
 0x235   :  { %v4351_v15 = vpack.c.bf16 %v1781_v63, %v1774_v3  ;;  %v1851_v3 = vand.u32 4294901760, %v1850_v48  ;;  %v4590_v63 = vand.u32 4294901760, %v4321_v40 }
 0x236   :  { %3289 = vmatpush3.bf16.msra.mxu1 %v3986_v42  ;;  %v1659_v42 = vld [vmem:[#allocation8 + $0x20] sm:$0xff]  ;;  %3304 = vmatpush3.bf16.msra.mxu0 %v4277_v39  ;;  %v1793_v50 = vand.u32 4294901760, %v4301_v14  ;;  %v1788_v34 = vand.u32 4294901760, %v1787_v1  ;;  %v4589_v1 = vand.u32 4294901760, %v4323_v24  ;;  %v3351_v35 = vpack.c.bf16 %v4301_v14, %v4299_v6 }
 0x237   :  { %3290 = vmatprep.subr.bf16.mxu1 %v3620_v47  ;;  %3305 = vmatprep.subr.bf16.mxu0 %v3620_v47  ;;  %v4655_v6 = vand.u32 4294901760, %v4312_v10 }
 0x238   :  { %v1794_v18 = vsub.f32 %v4301_v14, %v1793_v50  ;;  %v4656_v14 = vand.u32 4294901760, %v4314_v57 }
 0x23a   :  { %3292 = vmatpush3.bf16.msra.mxu1 %v3990_v20  ;;  %v1691_v20 = vand.u32 4294901760, %v1659_v42 }
 0x23b   :  { %3293 = vmatprep.subr.bf16.mxu1 %v3620_v47 }
 0x23c   :  { %v4303_v62 = vsub.f32 %v1659_v42, %v1691_v20  ;;  %v1795_v42 = vand.u32 4294901760, %v1794_v18  ;;  %v3339_v18 = vpack.c.bf16 %v1851_v3, %v1844_v45  ;;  %v3360_v45 = vpack.c.bf16 %v4314_v57, %v4312_v10 }
 0x23d   :  { %v3363_v3 = vpack.c.bf16 %v4319_v33, %v4317_v43  ;;  %v4661_v10 = vand.u32 4294901760, %v4329_v4  ;;  %v4662_v57 = vand.u32 4294901760, %v4331_v23 }
 0x23e   :  { %3295 = vmatpush3.bf16.msra.mxu1 %v3998_v41  ;;  %v4281_v41 = vpack.c.bf16 %v1694_v8, %v1691_v20  ;;  %v1800_v28 = vand.u32 4294901760, %v4303_v62  ;;  %v1808_v20 = vsub.f32 %v4305_v27, %v1807_v61  ;;  %v4359_v8 = vpack.c.bf16 %v1795_v42, %v1788_v34 }
 0x23f   :  { %3296 = vmatprep.subr.bf16.mxu1 %v3620_v47  ;;  %v1857_v34 = vsub.f32 %v4321_v40, %v4590_v63  ;;  %v1864_v42 = vsub.f32 %v4323_v24, %v4589_v1  ;;  %v3354_v55 = vpack.c.bf16 %v4305_v27, %v4303_v62  ;;  %v4658_v27 = vand.u32 4294901760, %v4319_v33 }
 0x240   :  { %3307 = vmatpush3.bf16.msra.mxu0 %v4281_v41  ;;  %v1801_v7 = vsub.f32 %v4303_v62, %v1800_v28  ;;  %v3402_v53 = vpack.c.bf16 %v1807_v61, %v1800_v28  ;;  %v4657_v62 = vand.u32 4294901760, %v4317_v43 }
 0x241   :  { %3308 = vmatprep.subr.bf16.mxu0 %v3620_v47 }
 0x242   :  { %3298 = vmatpush3.bf16.msra.mxu1 %v4032_v36  ;;  %v1662_v36 = vld [vmem:[#allocation8 + $0x38] sm:$0xff] }
 0x243   :  { %v1700_v54 = vand.u32 4294901760, %v1662_v36 }
 0x245   :  { %2751 = vmatmul.mubr.f32.vlgmr.msra.gmra.mrb[2].mxu1 %v4131_v26  ;;  %v1697_v26 = vand.u32 4294901760, %v1661_v9  ;;  %v4310_v19 = vsub.f32 %v1662_v36, %v1700_v54  ;;  %v1809_v36 = vand.u32 4294901760, %v1808_v20  ;;  %v1865_v20 = vand.u32 4294901760, %v1864_v42 }
 0x246   :  { %v3369_v42 = vpack.c.bf16 %v4331_v23, %v4329_v4 }
 0x247   :  { %v4285_v37 = vpack.c.bf16 %v1700_v54, %v1697_v26  ;;  %v4308_v30 = vsub.f32 %v1661_v9, %v1697_v26  ;;  %v1802_v9 = vand.u32 4294901760, %v1801_v7  ;;  %v1821_v54 = vand.u32 4294901760, %v4310_v19 }
 0x248   :  { %v1858_v7 = vand.u32 4294901760, %v1857_v34  ;;  %v3366_v34 = vpack.c.bf16 %v4323_v24, %v4321_v40 }
 0x249   :  { %3310 = vmatpush3.bf16.msra.mxu0 %v4285_v37  ;;  %v1814_v26 = vand.u32 4294901760, %v4308_v30  ;;  %v3330_v5 = vpack.c.bf16 %v1809_v36, %v1802_v9  ;;  %v1822_v16 = vsub.f32 %v4310_v19, %v1821_v54  ;;  %v4588_v9 = vand.u32 4294901760, %v4329_v4 }
 0x24a   :  { %3311 = vmatprep.subr.bf16.mxu0 %v3620_v47  ;;  %v4587_v36 = vand.u32 4294901760, %v4331_v23  ;;  %v3357_v48 = vpack.c.bf16 %v4310_v19, %v4308_v30  ;;  %v4660_v19 = vand.u32 4294901760, %v4323_v24 }
 0x24b   :  { %v1815_v29 = vsub.f32 %v4308_v30, %v1814_v26  ;;  %v1823_v2 = vand.u32 4294901760, %v1822_v16  ;;  %v1871_v16 = vsub.f32 %v4329_v4, %v4588_v9  ;;  %v3405_v52 = vpack.c.bf16 %v1821_v54, %v1814_v26 }
 0x24c   :  { %v4659_v30 = vand.u32 4294901760, %v4321_v40 }
 0x24d   :  { %3313 = vmatpush3.bf16.msra.mxu0 %v4289_v46  ;;  %v1816_v21 = vand.u32 4294901760, %v1815_v29  ;;  %v3342_v29 = vpack.c.bf16 %v1865_v20, %v1858_v7  ;;  %v2337_v7 = vld [vmem:[%s4544_s4] ss:$0 sm:$0xff] }
 0x24e   :  { %3314 = vmatprep.subr.bf16.mxu0 %v3620_v47 }
 0x24f   :  { %v3333_v59 = vpack.c.bf16 %v1823_v2, %v1816_v21  ;;  %v1878_v21 = vsub.f32 %v4331_v23, %v4587_v36  ;;  %v1872_v2 = vand.u32 4294901760, %v1871_v16 }
 0x251   :  { %3316 = vmatpush3.bf16.msra.mxu0 %v4293_v60  ;;  %v1879_v58 = vand.u32 4294901760, %v1878_v21 }
 0x252   :  { %3317 = vmatprep.subr.bf16.mxu0 %v3620_v47 }
 0x253   :  { %v3345_v25 = vpack.c.bf16 %v1879_v58, %v1872_v2 }
 0x255   :  { %3319 = vmatpush3.bf16.msra.mxu0 %v4297_v38 }
 0x256   :  { %3320 = vmatprep.subr.bf16.mxu0 %v3620_v47 }
 0x259   :  { %3322 = vmatpush3.bf16.msra.mxu0 %v4327_v22 }
 0x25a   :  { %3323 = vmatprep.subr.bf16.mxu0 %v3620_v47 }
 0x318   :  { %v1646_v20 = vpop.f32.mrb[2].mxu1 }
 0x319   :  { %v3447_v16 = vadd.f32 %v2337_v7, %v1646_v20  ;;  %v2752_v21 = vpop.f32.mrb[3].mxu1 }
 0x31b   :  { %v1651_v2 = vmul.f32 0.70710677, %v3447_v16  ;;  %v1650_v36 = vmul.f32 0.5, %v3447_v16 }
 0x31d   :  { %3491 = verf.f32 %v1651_v2 }
 0x327   :  { %v3492_v58 = vpop.eup %3491 }
 0x328   :  { %v1653_v9 = vadd.f32 1.0, %v3492_v58 }
 0x32a   :  { %v1654_v1 = vmul.f32 %v1653_v9, %v1650_v36 }
 0x32c   :  { %v4420_v63 = vand.u32 4294901760, %v1654_v1 }
 0x32e   :  { %v1760_v31 = vsub.f32 %v1654_v1, %v4420_v63 }
 0x330   :  { %v1761_v11 = vand.u32 4294901760, %v1760_v31 }
 0x332   :  { %v1762_v51 = vsub.f32 %v1760_v31, %v1761_v11 }
 0x334   :  { %v1763_v13 = vand.u32 4294901760, %v1762_v51 }
 0x336   :  { %2786 = vmatmul.mubr.f32.vlgmr.msra.gmra.mrb[2].mxu0 %v1763_v13 }
 0x337   :  { %3325 = vmatpush3.bf16.msra.mxu0 %v4351_v15  ;;  %2820 = vmatprep.mubr.msk.f32.mxu0 %vm3621_vm0, %v4617_v44  ;;  %v3396_v15 = vpack.c.bf16 %v1779_v12, %v1772_v0  ;;  %v3408_v0 = vpack.c.bf16 %v4656_v14, %v4655_v6  ;;  %v3411_v12 = vpack.c.bf16 %v4658_v27, %v4657_v62 }
 0x338   :  { %3326 = vmatprep.subr.bf16.mxu0 %v3620_v47 }
 0x33b   :  { %3328 = vmatpush3.bf16.msra.mxu0 %v4359_v8  ;;  %v3399_v8 = vpack.c.bf16 %v1793_v50, %v1786_v17  ;;  %v3414_v17 = vpack.c.bf16 %v4660_v19, %v4659_v30  ;;  %v3417_v50 = vpack.c.bf16 %v4662_v57, %v4661_v10 }
 0x33c   :  { %3329 = vmatprep.subr.bf16.mxu0 %v3620_v47 }
 0x33f   :  { %3331 = vmatpush3.bf16.msra.mxu0 %v3330_v5 }
 0x340   :  { %3332 = vmatprep.subr.bf16.mxu0 %v3620_v47 }
 0x343   :  { %3334 = vmatpush3.bf16.msra.mxu0 %v3333_v59 }
 0x344   :  { %3335 = vmatprep.subr.bf16.mxu0 %v3620_v47 }
 0x347   :  { %3337 = vmatpush3.bf16.msra.mxu0 %v3336_v49 }
 0x348   :  { %3338 = vmatprep.subr.bf16.mxu0 %v3620_v47 }
 0x34b   :  { %3340 = vmatpush3.bf16.msra.mxu0 %v3339_v18 }
 0x34c   :  { %3341 = vmatprep.subr.bf16.mxu0 %v3620_v47 }
 0x34f   :  { %3343 = vmatpush3.bf16.msra.mxu0 %v3342_v29 }
 0x350   :  { %3344 = vmatprep.subr.bf16.mxu0 %v3620_v47 }
 0x353   :  { %3346 = vmatpush3.bf16.msra.mxu0 %v3345_v25 }
 0x354   :  { %3347 = vmatprep.subr.bf16.mxu0 %v3620_v47 }
 0x356   :  { %2821 = vmatmul.mubr.f32.vlgmr.msra.gmra.mrb[2].mxu0 %v4420_v63 }
 0x357   :  { %3349 = vmatpush3.bf16.msra.mxu0 %v3348_v32  ;;  %2855 = vmatprep.mubr.msk.f32.mxu0 %vm3621_vm0, %v4617_v44 }
 0x358   :  { %3350 = vmatprep.subr.bf16.mxu0 %v3620_v47 }
 0x35b   :  { %3352 = vmatpush3.bf16.msra.mxu0 %v3351_v35 }
 0x35c   :  { %3353 = vmatprep.subr.bf16.mxu0 %v3620_v47 }
 0x35f   :  { %3355 = vmatpush3.bf16.msra.mxu0 %v3354_v55 }
 0x360   :  { %3356 = vmatprep.subr.bf16.mxu0 %v3620_v47 }
 0x363   :  { %3358 = vmatpush3.bf16.msra.mxu0 %v3357_v48 }
 0x364   :  { %3359 = vmatprep.subr.bf16.mxu0 %v3620_v47 }
 0x367   :  { %3361 = vmatpush3.bf16.msra.mxu0 %v3360_v45 }
 0x368   :  { %3362 = vmatprep.subr.bf16.mxu0 %v3620_v47 }
 0x36b   :  { %3364 = vmatpush3.bf16.msra.mxu0 %v3363_v3 }
 0x36c   :  { %3365 = vmatprep.subr.bf16.mxu0 %v3620_v47 }
 0x36f   :  { %3367 = vmatpush3.bf16.msra.mxu0 %v3366_v34 }
 0x370   :  { %3368 = vmatprep.subr.bf16.mxu0 %v3620_v47 }
 0x373   :  { %3370 = vmatpush3.bf16.msra.mxu0 %v3369_v42 }
 0x374   :  { %3371 = vmatprep.subr.bf16.mxu0 %v3620_v47 }
 0x376   :  { %2856 = vmatmul.mubr.f32.vlgmr.msra.gmra.mrb[2].mxu0 %v1760_v31 }
 0x377   :  { %3373 = vmatpush3.bf16.msra.mxu0 %v4159_v56  ;;  %2890 = vmatprep.mubr.msk.f32.mxu0 %vm3621_vm0, %v4617_v44 }
 0x378   :  { %3374 = vmatprep.subr.bf16.mxu0 %v3620_v47 }
 0x37b   :  { %3376 = vmatpush3.bf16.msra.mxu0 %v4277_v39 }
 0x37c   :  { %3377 = vmatprep.subr.bf16.mxu0 %v3620_v47 }
 0x37f   :  { %3379 = vmatpush3.bf16.msra.mxu0 %v4281_v41 }
 0x380   :  { %3380 = vmatprep.subr.bf16.mxu0 %v3620_v47 }
 0x383   :  { %3382 = vmatpush3.bf16.msra.mxu0 %v4285_v37 }
 0x384   :  { %3383 = vmatprep.subr.bf16.mxu0 %v3620_v47 }
 0x387   :  { %3385 = vmatpush3.bf16.msra.mxu0 %v4289_v46 }
 0x388   :  { %3386 = vmatprep.subr.bf16.mxu0 %v3620_v47 }
 0x38b   :  { %3388 = vmatpush3.bf16.msra.mxu0 %v4293_v60 }
 0x38c   :  { %3389 = vmatprep.subr.bf16.mxu0 %v3620_v47 }
 0x38f   :  { %3391 = vmatpush3.bf16.msra.mxu0 %v4297_v38 }
 0x390   :  { %3392 = vmatprep.subr.bf16.mxu0 %v3620_v47 }
 0x393   :  { %3394 = vmatpush3.bf16.msra.mxu0 %v4327_v22 }
 0x394   :  { %3395 = vmatprep.subr.bf16.mxu0 %v3620_v47 }
 0x396   :  { %2891 = vmatmul.mubr.f32.vlgmr.msra.gmra.mrb[2].mxu0 %v1761_v11 }
 0x397   :  { %3397 = vmatpush3.bf16.msra.mxu0 %v3396_v15  ;;  %2925 = vmatprep.mubr.msk.f32.mxu0 %vm3621_vm0, %v4617_v44 }
 0x398   :  { %3398 = vmatprep.subr.bf16.mxu0 %v3620_v47 }
 0x39b   :  { %3400 = vmatpush3.bf16.msra.mxu0 %v3399_v8 }
 0x39c   :  { %3401 = vmatprep.subr.bf16.mxu0 %v3620_v47 }
 0x39f   :  { %3403 = vmatpush3.bf16.msra.mxu0 %v3402_v53 }
 0x3a0   :  { %3404 = vmatprep.subr.bf16.mxu0 %v3620_v47 }
 0x3a3   :  { %3406 = vmatpush3.bf16.msra.mxu0 %v3405_v52 }
 0x3a4   :  { %3407 = vmatprep.subr.bf16.mxu0 %v3620_v47 }
 0x3a7   :  { %3409 = vmatpush3.bf16.msra.mxu0 %v3408_v0 }
 0x3a8   :  { %3410 = vmatprep.subr.bf16.mxu0 %v3620_v47 }
 0x3ab   :  { %3412 = vmatpush3.bf16.msra.mxu0 %v3411_v12 }
 0x3ac   :  { %3413 = vmatprep.subr.bf16.mxu0 %v3620_v47 }
 0x3af   :  { %3415 = vmatpush3.bf16.msra.mxu0 %v3414_v17 }
 0x3b0   :  { %3416 = vmatprep.subr.bf16.mxu0 %v3620_v47 }
 0x3b3   :  { %3418 = vmatpush3.bf16.msra.mxu0 %v3417_v50 }
 0x3b4   :  { %3419 = vmatprep.subr.bf16.mxu0 %v3620_v47 }
 0x3b6   :  { %2926 = vmatmul.mubr.f32.vlgmr.msra.gmra.mrb[2].mxu0 %v4420_v63 }
 0x3b7   :  { %3421 = vmatpush3.bf16.msra.mxu0 %v4159_v56  ;;  %2960 = vmatprep.mubr.msk.f32.mxu0 %vm3621_vm0, %v4617_v44  ;;  %v2338_v44 = vld [vmem:[%s4546_s6] ss:$0 sm:$0xff] }
 0x3b8   :  { %3422 = vmatprep.subr.bf16.mxu0 %v3620_v47 }
 0x3bb   :  { %3424 = vmatpush3.bf16.msra.mxu0 %v4277_v39 }
 0x3bc   :  { %3425 = vmatprep.subr.bf16.mxu0 %v3620_v47 }
 0x3bf   :  { %3427 = vmatpush3.bf16.msra.mxu0 %v4281_v41 }
 0x3c0   :  { %3428 = vmatprep.subr.bf16.mxu0 %v3620_v47 }
 0x3c3   :  { %3430 = vmatpush3.bf16.msra.mxu0 %v4285_v37 }
 0x3c4   :  { %3431 = vmatprep.subr.bf16.mxu0 %v3620_v47 }
 0x3c7   :  { %3433 = vmatpush3.bf16.msra.mxu0 %v4289_v46 }
 0x3c8   :  { %3434 = vmatprep.subr.bf16.mxu0 %v3620_v47 }
 0x3cb   :  { %3436 = vmatpush3.bf16.msra.mxu0 %v4293_v60 }
 0x3cc   :  { %3437 = vmatprep.subr.bf16.mxu0 %v3620_v47 }
 0x3cf   :  { %3439 = vmatpush3.bf16.msra.mxu0 %v4297_v38 }
 0x3d0   :  { %3440 = vmatprep.subr.bf16.mxu0 %v3620_v47 }
 0x3d3   :  { %3442 = vmatpush3.bf16.msra.mxu0 %v4327_v22 }
 0x3d6   :  { %2961 = vmatmul.mubr.f32.vlgmr.msra.gmra.mrb[2].mxu0 %v4420_v63 }
 0x4a9   :  { %v2315_v56 = vpop.f32.mrb[2].mxu0 }
 0x4aa   :  { %v3448_v39 = vadd.f32 %v2338_v44, %v2315_v56  ;;  %v2962_v41 = vpop.f32.mrb[3].mxu0 }
 0x4ac   :  { %2319 = vst [vmem:[#allocation10] sm:$0xff] %v3448_v39 }
 0x4ad   :  { %3592 = shalt.err (!%p3589_p8)
}
 0x4ae   :  { %s3593_s11 = scalar_lea.hbm %s4547_s7, 128 }
 0x4af   :  { %p3594_p9 = scmp.ne.s32.totalorder %s4547_s7, %s3593_s11  ;;  %p3597_p10 = scmp.lt.u32.totalorder %s3593_s11, %s4547_s7 }
 0x4b1   :  { %p3599_p11 = pnand %p3597_p10, %p3594_p9 }
 0x4b3   :  { %3602 = shalt.err (!%p3599_p11)
}
 0x4b4   :  { %2329 = dma.vmem_to_hbm [thread:$0]  %s2327_s30, 128, %s4547_s7, [#allocation4]  }
 0x4b5   :  { %3609 = dma.done.wait [#allocation4], 128  }
 0x4b6   :  { %3610 = vsyncadd [#allocation4], 4294967168 }
 0x4b7   :  { %2333 = vsyncpa [#allocation3], 1 }
 0x4b8   :  { %2334 = vsyncpa [#allocation6], 1 }
 0x4b9   :  { %2335 = vsyncpa [#allocation9], 1 }
 0x4ba   :  { %2336 = vsyncpa [#allocation4], 1 }

</bundles_post_ra>
